<compile_context>
chip_gen: v7x
topology: tpu7x:2x2x1
jax: 0.10.0
libtpu: 0.0.40
codegen_flags: <defaults>
</compile_context>

<pallas_src>
import functools

import jax
import jax.numpy as jnp
from jax.experimental import pallas as pl
from jax.experimental.pallas import tpu as pltpu

RMS_EPS = 1e-6
NEG_INF = -1e9


def _rmsnorm(x, w):
    # x: [S, D] f32, w: [1, D] f32
    ms = jnp.mean(x * x, axis=-1, keepdims=True)
    return x * jax.lax.rsqrt(ms + RMS_EPS) * w


def _mha(xq, xkv_bf, keep_mask, w_ref, b_ref, num_heads):
    """Head-batched multi-head attention on one sample / query tile.

    xq:        [Sq, D] f32   query activations
    xkv_bf:    [Sk, D] bf16  key/value source activations
    keep_mask: [Sq, Sk] bool True = attend
    w_ref:     [4, D, D] bf16 stacked (Wq, Wk, Wv, Wo)
    b_ref:     [4, 1, D] f32  stacked biases
    All matmuls run bf16 x bf16 -> f32 on the MXU; softmax stays f32.
    """
    Sq, D = xq.shape
    dk = D // num_heads
    scale = 1.0 / (dk ** 0.5)

    # Full-D projections: three big MXU matmuls with K = D (no per-head thin matmuls).
    q = jnp.dot(xq.astype(jnp.bfloat16), w_ref[0],
                preferred_element_type=jnp.float32) + b_ref[0]
    k = jnp.dot(xkv_bf, w_ref[1], preferred_element_type=jnp.float32) + b_ref[1]
    v = jnp.dot(xkv_bf, w_ref[2], preferred_element_type=jnp.float32) + b_ref[2]

    # Pack heads on a leading batch axis (layout plumbing only; static lane slices +
    # concat).  All attention matmuls below are head-batched einsums.
    def split_heads(t):
        return jnp.stack(
            [t[:, h * dk:(h + 1) * dk] for h in range(num_heads)], axis=0
        ).astype(jnp.bfloat16)                                      # [H, S, dk]

    qh, kh, vh = split_heads(q), split_heads(k), split_heads(v)

    # Scores + softmax, all in f32.
    s = jnp.einsum('hqd,hkd->hqk', qh, kh,
                   preferred_element_type=jnp.float32) * scale      # [H, Sq, Sk]
    s = jnp.where(jnp.broadcast_to(keep_mask[None, :, :], s.shape), s, NEG_INF)
    s = s - jnp.max(s, axis=-1, keepdims=True)
    p = jnp.exp(s)
    p = p * pl.reciprocal(jnp.sum(p, axis=-1, keepdims=True), approx=True)

    o = jnp.einsum('hqk,hkd->hqd', p.astype(jnp.bfloat16), vh,
                   preferred_element_type=jnp.float32)              # [H, Sq, dk]
    # Concat heads -> [Sq, D] then ONE output projection against Wo.
    o = jnp.concatenate([o[h] for h in range(num_heads)], axis=-1)
    return jnp.dot(o.astype(jnp.bfloat16), w_ref[3],
                   preferred_element_type=jnp.float32) + b_ref[3]


def _decoder_layer_kernel(num_heads, residual_scale, q_tile,
                          ctx_len_ref,                      # scalar prefetch (SMEM, [B])
                          x_ref, mem_ref,
                          saw_ref, sab_ref, caw_ref, cab_ref,
                          fwi_ref, fbi_ref, fwo_ref, fbo_ref,
                          nw_ref, out_ref):
    b = pl.program_id(0)
    qi = pl.program_id(1)

    S = x_ref.shape[1]
    S_g = mem_ref.shape[1]
    F = fwi_ref.shape[1] // 2

    # Query slab for this grid step, sliced from the resident kv tile (kv == x at step 0;
    # avoids a second [B,S,D] HBM stream).
    q0 = pl.multiple_of(qi * q_tile, q_tile)
    xq = x_ref[0, pl.ds(q0, q_tile), :]           # [TQ, D]  f32
    x_kv = x_ref[0]                               # [S, D]   f32
    mem = mem_ref[0]                              # [S_g, D] bf16
    nw = nw_ref[0]                                # [3, D]   f32 task-selected norm weights

    # In-kernel masks (no O(S^2) float-mask DMA).
    row = q0 + jax.lax.broadcasted_iota(jnp.int32, (q_tile, S), 0)
    col = jax.lax.broadcasted_iota(jnp.int32, (q_tile, S), 1)
    causal = row >= col                           # [TQ, S] bool
    g_col = jax.lax.broadcasted_iota(jnp.int32, (q_tile, S_g), 1)
    ctx_valid = g_col < ctx_len_ref[b]            # [TQ, S_g] bool (per-batch valid length)

    # --- masked self-attention + residual + task-norm 0 ----------------------
    attn_self = _mha(xq, x_kv.astype(jnp.bfloat16), causal, saw_ref, sab_ref, num_heads)
    h = attn_self + xq * residual_scale           # dropout1 == identity (eval)
    h = _rmsnorm(h, nw[0:1, :])

    # --- context (cross) attention over graph memory; query is the ORIGINAL x
    attn_ctx = _mha(xq, mem, ctx_valid, caw_ref, cab_ref, num_heads)
    h = attn_ctx + h                              # dropout2 == identity
    h = _rmsnorm(h, nw[1:2, :])

    # --- GLU feed-forward (fused value|gate in-projection) + residual + norm 2
    ag = jnp.dot(h.astype(jnp.bfloat16), fwi_ref[...],
                 preferred_element_type=jnp.float32) + fbi_ref[...]   # [TQ, 2F] f32
    a = ag[:, :F]
    g = ag[:, F:]
    ff = jnp.dot((a * jax.nn.sigmoid(g)).astype(jnp.bfloat16), fwo_ref[...],
                 preferred_element_type=jnp.float32) + fbo_ref[...]
    h = ff + h * residual_scale                   # dropout3 == identity
    h = _rmsnorm(h, nw[2:3, :])

    out_ref[0] = h.astype(out_ref.dtype)


def decoder_layer_forward(x, graph_mem, ctx_len, params, num_list, *,
                          num_heads, residual_scale=1.0, q_tile=None):
    """step == 0 decoder layer forward.  ctx_len[b] = number of valid graph tokens."""
    B, S, D = x.shape
    S_g = graph_mem.shape[1]
    F = params['ff_w_in'].shape[-1]

    # TODO(synk): pad D to a multiple of 128 / S to a multiple of 8 in this wrapper for
    # non-aligned model dims; real model dims are assumed aligned here.
    assert D % 128 == 0 and D % num_heads == 0
    if q_tile is None:
        q_tile = S if S <= 128 else 128
    assert S % q_tile == 0 and q_tile % 8 == 0
    n_q = S // q_tile

    # dualtask: first num_list[0] rows -> norm_t1 weights, rest -> norm_t2 weights
    group_id = jnp.concatenate([jnp.zeros((num_list[0],), jnp.int32),
                                jnp.ones((num_list[1],), jnp.int32)])
    norm_w = params['norm_w'][group_id]                     # [B, 3, D] f32

    # bf16 MXU operands (weights + graph memory); biases / norm weights stay f32.
    bf16 = jnp.bfloat16
    sa_w = params['sa_w'].astype(bf16)
    ca_w = params['ca_w'].astype(bf16)
    fwi = jnp.concatenate([params['ff_w_in'][0], params['ff_w_in'][1]],
                          axis=-1).astype(bf16)             # [D, 2F]  fused value|gate
    fbi = jnp.concatenate([params['ff_b_in'][0], params['ff_b_in'][1]], axis=-1)  # [1, 2F]
    fwo = params['ff_w_out'].astype(bf16)
    mem_bf = graph_mem.astype(bf16)

    kernel = functools.partial(_decoder_layer_kernel, num_heads, residual_scale, q_tile)

    grid_spec = pltpu.PrefetchScalarGridSpec(
        num_scalar_prefetch=1,                              # ctx_len -> SMEM
        grid=(B, n_q),
        in_specs=[
            pl.BlockSpec((1, S, D),   lambda b, q, ctx: (b, 0, 0)),   # x (kv + query slab)
            pl.BlockSpec((1, S_g, D), lambda b, q, ctx: (b, 0, 0)),   # graph memory (bf16)
            pl.BlockSpec((4, D, D),   lambda b, q, ctx: (0, 0, 0)),   # self-attn Wq/Wk/Wv/Wo
            pl.BlockSpec((4, 1, D),   lambda b, q, ctx: (0, 0, 0)),   # self-attn biases
            pl.BlockSpec((4, D, D),   lambda b, q, ctx: (0, 0, 0)),   # cross-attn W
            pl.BlockSpec((4, 1, D),   lambda b, q, ctx: (0, 0, 0)),   # cross-attn biases
            pl.BlockSpec((D, 2 * F),  lambda b, q, ctx: (0, 0)),      # FFN in (value|gate)
            pl.BlockSpec((1, 2 * F),  lambda b, q, ctx: (0, 0)),      # FFN in bias
            pl.BlockSpec((F, D),      lambda b, q, ctx: (0, 0)),      # FFN out W
            pl.BlockSpec((1, D),      lambda b, q, ctx: (0, 0)),      # FFN out bias
            pl.BlockSpec((1, 3, D),   lambda b, q, ctx: (b, 0, 0)),   # per-batch norm w
        ],
        out_specs=pl.BlockSpec((1, q_tile, D), lambda b, q, ctx: (b, q, 0)),
    )

    return pl.pallas_call(
        kernel,
        out_shape=jax.ShapeDtypeStruct((B, S, D), x.dtype),
        grid_spec=grid_spec,
        compiler_params=pltpu.CompilerParams(
            dimension_semantics=("parallel", "parallel"),
            vmem_limit_bytes=48 * 1024 * 1024),
    )(ctx_len, x, mem_bf, sa_w, params['sa_b'], ca_w, params['ca_b'],
      fwi, fbi, fwo, params['ff_b_out'], norm_w)
    # TODO(synk): step > 0 incremental decoding (cache['last'] concat + writeback via
    # input_output_aliases) is handled by the caller; this kernel covers the step-0 path.


# ------------------------- plain-JAX reference ------------------------------
def _mha_ref(xq, xkv, keep_mask, w, b, num_heads):
    Sq, D = xq.shape
    Sk = xkv.shape[0]
    dk = D // num_heads
    q = xq @ w[0] + b[0]
    k = xkv @ w[1] + b[1]
    v = xkv @ w[2] + b[2]
    qh = jnp.transpose(q.reshape(Sq, num_heads, dk), (1, 0, 2))
    kh = jnp.transpose(k.reshape(Sk, num_heads, dk), (1, 0, 2))
    vh = jnp.transpose(v.reshape(Sk, num_heads, dk), (1, 0, 2))
    s = jnp.einsum('hqd,hkd->hqk', qh, kh) / (dk ** 0.5)
    s = jnp.where(keep_mask[None], s, NEG_INF)
    p = jax.nn.softmax(s, axis=-1)
    o = jnp.einsum('hqk,hkd->hqd', p, vh)
    o = jnp.transpose(o, (1, 0, 2)).reshape(Sq, D)
    return o @ w[3] + b[3]


def _reference_one(x, mem, ctx_len, nw, *, params, num_heads, residual_scale):
    S = x.shape[0]
    S_g = mem.shape[0]
    causal = jnp.arange(S)[:, None] >= jnp.arange(S)[None, :]
    ctx_valid = jnp.broadcast_to(jnp.arange(S_g)[None, :] < ctx_len, (S, S_g))
    h = _mha_ref(x, x, causal, params['sa_w'], params['sa_b'], num_heads) \
        + x * residual_scale
    h = _rmsnorm(h, nw[0:1, :])
    h = _mha_ref(x, mem, ctx_valid, params['ca_w'], params['ca_b'], num_heads) + h
    h = _rmsnorm(h, nw[1:2, :])
    a = h @ params['ff_w_in'][0] + params['ff_b_in'][0]
    g = h @ params['ff_w_in'][1] + params['ff_b_in'][1]
    ff = (a * jax.nn.sigmoid(g)) @ params['ff_w_out'] + params['ff_b_out']
    h = ff + h * residual_scale
    h = _rmsnorm(h, nw[2:3, :])
    return h


# ------------------------- parameter init -----------------------------------
def init_params(key, d_model, d_ff):
    ks = jax.random.split(key, 6)
    s_d = 1.0 / (d_model ** 0.5)
    s_f = 1.0 / (d_ff ** 0.5)
    return {
        'sa_w': jax.random.normal(ks[0], (4, d_model, d_model), jnp.float32) * s_d,
        'sa_b': 0.01 * jax.random.normal(ks[1], (4, 1, d_model), jnp.float32),
        'ca_w': jax.random.normal(ks[2], (4, d_model, d_model), jnp.float32) * s_d,
        'ca_b': jnp.zeros((4, 1, d_model), jnp.float32),
        'ff_w_in': jax.random.normal(ks[3], (2, d_model, d_ff), jnp.float32) * s_d,
        'ff_b_in': jnp.zeros((2, 1, d_ff), jnp.float32),
        'ff_w_out': jax.random.normal(ks[4], (d_ff, d_model), jnp.float32) * s_f,
        'ff_b_out': jnp.zeros((1, d_model), jnp.float32),
        # norm_w[0] = norm_t1 (3 RMSNorms), norm_w[1] = norm_t2 (3 RMSNorms)
        'norm_w': 1.0 + 0.1 * jax.random.normal(ks[5], (2, 3, d_model), jnp.float32),
    }


if __name__ == "__main__":
    B, S, D, H, DFF = 2, 16, 128, 4, 256     # D lane-dense (128), S sublane-aligned
    S_G = 16
    Q_TILE = 8                               # grid = (B, S // Q_TILE) = (2, 2)
    num_list = [1, 1]                        # dualtask: 1 retro + 1 forward row
    residual_scale = 1.0

    key = jax.random.PRNGKey(0)
    k_x, k_g, k_p = jax.random.split(key, 3)
    x = jax.random.normal(k_x, (B, S, D), jnp.float32)
    graph_mem = jax.random.normal(k_g, (B, S_G, D), jnp.float32)
    params = init_params(k_p, D, DFF)

    # context mask expressed as per-batch valid graph length (batch 1 has 4 pad tokens)
    ctx_len = jnp.array([S_G, S_G - 4], jnp.int32)

    out = decoder_layer_forward(x, graph_mem, ctx_len, params, num_list,
                                num_heads=H, residual_scale=residual_scale,
                                q_tile=Q_TILE)
    out = jax.block_until_ready(out)

    # correctness check against a plain-JAX reference using the same bf16-quantized
    # MXU operands the kernel consumes (weights + graph memory), f32 everywhere else
    def q16(w):
        return w.astype(jnp.bfloat16).astype(jnp.float32)

    params_ref = dict(params)
    for name in ('sa_w', 'ca_w', 'ff_w_in', 'ff_w_out'):
        params_ref[name] = q16(params[name])

    group_id = jnp.array([0] * num_list[0] + [1] * num_list[1], jnp.int32)
    nw = params['norm_w'][group_id]
    ref_fn = jax.vmap(functools.partial(_reference_one, params=params_ref,
                                        num_heads=H, residual_scale=residual_scale),
                      in_axes=(0, 0, 0, 0))
    ref = ref_fn(x, q16(graph_mem), ctx_len, nw)
    err = float(jnp.max(jnp.abs(out - ref)))
    assert jnp.allclose(out, ref, atol=5e-2, rtol=5e-2), f"max abs err {err}"

    print("KERNEL_OK")
</pallas_src>

<mosaic_0001>
module attributes {stable_mosaic.version = 11 : i64} {
  func.func @_decoder_layer_kernel(%arg0: i32, %arg1: i32, %arg2: memref<2xi32, #tpu.memory_space<smem>>, %arg3: memref<1x16x128xf32, #tpu.memory_space<vmem>>, %arg4: memref<1x16x128xbf16, #tpu.memory_space<vmem>>, %arg5: memref<4x128x128xbf16, #tpu.memory_space<vmem>>, %arg6: memref<4x1x128xf32, #tpu.memory_space<vmem>>, %arg7: memref<4x128x128xbf16, #tpu.memory_space<vmem>>, %arg8: memref<4x1x128xf32, #tpu.memory_space<vmem>>, %arg9: memref<128x512xbf16, #tpu.memory_space<vmem>>, %arg10: memref<1x512xf32, #tpu.memory_space<vmem>>, %arg11: memref<256x128xbf16, #tpu.memory_space<vmem>>, %arg12: memref<1x128xf32, #tpu.memory_space<vmem>>, %arg13: memref<1x3x128xf32, #tpu.memory_space<vmem>>, %arg14: memref<1x8x128xf32, #tpu.memory_space<vmem>>) attributes {dimension_semantics = [#tpu.dimension_semantics<parallel>, #tpu.dimension_semantics<parallel>], iteration_bounds = array<i64: 2, 2>, scalar_prefetch = 1 : i64, scratch_operands = 0 : i64, tpu.core_type = #tpu.core_type<tc>, window_params = [{transform_indices = @transform_0, window_bounds = array<i64: 1, 16, 128>}, {transform_indices = @transform_1, window_bounds = array<i64: 1, 16, 128>}, {pipeline_mode = #tpu.pipeline_mode<synchronous>, transform_indices = @transform_2, window_bounds = array<i64: 4, 128, 128>}, {pipeline_mode = #tpu.pipeline_mode<synchronous>, transform_indices = @transform_3, window_bounds = array<i64: 4, 1, 128>}, {pipeline_mode = #tpu.pipeline_mode<synchronous>, transform_indices = @transform_4, window_bounds = array<i64: 4, 128, 128>}, {pipeline_mode = #tpu.pipeline_mode<synchronous>, transform_indices = @transform_5, window_bounds = array<i64: 4, 1, 128>}, {pipeline_mode = #tpu.pipeline_mode<synchronous>, transform_indices = @transform_6, window_bounds = array<i64: 128, 512>}, {pipeline_mode = #tpu.pipeline_mode<synchronous>, transform_indices = @transform_7, window_bounds = array<i64: 1, 512>}, {pipeline_mode = #tpu.pipeline_mode<synchronous>, transform_indices = @transform_8, window_bounds = array<i64: 256, 128>}, {pipeline_mode = #tpu.pipeline_mode<synchronous>, transform_indices = @transform_9, window_bounds = array<i64: 1, 128>}, {transform_indices = @transform_10, window_bounds = array<i64: 1, 3, 128>}, {transform_indices = @transform_11, window_bounds = array<i64: 1, 8, 128>}]} {
    %c8_i32 = arith.constant 8 : i32
    %0 = arith.muli %arg1, %c8_i32 : i32
    %1 = tpu.assume_multiple %0, 8 : i32
    %c0 = arith.constant 0 : index
    %2 = arith.index_cast %1 : i32 to index
    %c0_0 = arith.constant 0 : index
    %3 = vector.load %arg3[%c0, %2, %c0_0] : memref<1x16x128xf32, #tpu.memory_space<vmem>>, vector<1x8x128xf32>
    %4 = vector.shape_cast %3 : vector<1x8x128xf32> to vector<8x128xf32>
    %c0_1 = arith.constant 0 : index
    %c0_2 = arith.constant 0 : index
    %c0_3 = arith.constant 0 : index
    %5 = vector.load %arg3[%c0_1, %c0_2, %c0_3] : memref<1x16x128xf32, #tpu.memory_space<vmem>>, vector<1x16x128xf32>
    %6 = vector.shape_cast %5 : vector<1x16x128xf32> to vector<16x128xf32>
    %c0_4 = arith.constant 0 : index
    %c0_5 = arith.constant 0 : index
    %c0_6 = arith.constant 0 : index
    %7 = vector.load %arg4[%c0_4, %c0_5, %c0_6] : memref<1x16x128xbf16, #tpu.memory_space<vmem>>, vector<1x16x128xbf16>
    %8 = vector.shape_cast %7 : vector<1x16x128xbf16> to vector<16x128xbf16>
    %c0_7 = arith.constant 0 : index
    %c0_8 = arith.constant 0 : index
    %c0_9 = arith.constant 0 : index
    %9 = vector.load %arg13[%c0_7, %c0_8, %c0_9] : memref<1x3x128xf32, #tpu.memory_space<vmem>>, vector<1x3x128xf32>
    %10 = vector.shape_cast %9 : vector<1x3x128xf32> to vector<3x128xf32>
    %11 = tpu.iota {dimensions = array<i32: 0>} : vector<8x16xi32>
    %12 = vector.broadcast %1 : i32 to vector<8x16xi32>
    %13 = arith.addi %12, %11 : vector<8x16xi32>
    %14 = tpu.iota {dimensions = array<i32: 1>} : vector<8x16xi32>
    %15 = arith.cmpi sge, %13, %14 : vector<8x16xi32>
    %16 = tpu.iota {dimensions = array<i32: 1>} : vector<8x16xi32>
    %17 = arith.index_cast %arg0 : i32 to index
    %18 = memref.load %arg2[%17] : memref<2xi32, #tpu.memory_space<smem>>
    %19 = vector.broadcast %18 : i32 to vector<8x16xi32>
    %20 = arith.cmpi slt, %16, %19 : vector<8x16xi32>
    %21 = arith.truncf %6 : vector<16x128xf32> to vector<16x128xbf16>
    %22 = arith.truncf %4 : vector<8x128xf32> to vector<8x128xbf16>
    %c0_10 = arith.constant 0 : index
    %c0_11 = arith.constant 0 : index
    %c0_12 = arith.constant 0 : index
    %23 = vector.load %arg5[%c0_10, %c0_11, %c0_12] : memref<4x128x128xbf16, #tpu.memory_space<vmem>>, vector<1x128x128xbf16>
    %24 = vector.shape_cast %23 : vector<1x128x128xbf16> to vector<128x128xbf16>
    %cst = arith.constant dense<0.000000e+00> : vector<8x128xf32>
    %25 = tpu.matmul %22, %24, %cst {dimension_numbers = #tpu.dot_dimension_numbers<[1], [0], [0], [1], [0, 0, 1, 1], [], []>} : vector<8x128xbf16>, vector<128x128xbf16>, vector<8x128xf32> -> vector<8x128xf32>
    %c0_13 = arith.constant 0 : index
    %c0_14 = arith.constant 0 : index
    %c0_15 = arith.constant 0 : index
    %26 = vector.load %arg6[%c0_13, %c0_14, %c0_15] : memref<4x1x128xf32, #tpu.memory_space<vmem>>, vector<1x1x128xf32>
    %27 = vector.shape_cast %26 : vector<1x1x128xf32> to vector<1x128xf32>
    %28 = vector.broadcast %27 : vector<1x128xf32> to vector<8x128xf32>
    %29 = arith.addf %25, %28 : vector<8x128xf32>
    %c1 = arith.constant 1 : index
    %c0_16 = arith.constant 0 : index
    %c0_17 = arith.constant 0 : index
    %30 = vector.load %arg5[%c1, %c0_16, %c0_17] : memref<4x128x128xbf16, #tpu.memory_space<vmem>>, vector<1x128x128xbf16>
    %31 = vector.shape_cast %30 : vector<1x128x128xbf16> to vector<128x128xbf16>
    %cst_18 = arith.constant dense<0.000000e+00> : vector<16x128xf32>
    %32 = tpu.matmul %21, %31, %cst_18 {dimension_numbers = #tpu.dot_dimension_numbers<[1], [0], [0], [1], [0, 0, 1, 1], [], []>} : vector<16x128xbf16>, vector<128x128xbf16>, vector<16x128xf32> -> vector<16x128xf32>
    %c1_19 = arith.constant 1 : index
    %c0_20 = arith.constant 0 : index
    %c0_21 = arith.constant 0 : index
    %33 = vector.load %arg6[%c1_19, %c0_20, %c0_21] : memref<4x1x128xf32, #tpu.memory_space<vmem>>, vector<1x1x128xf32>
    %34 = vector.shape_cast %33 : vector<1x1x128xf32> to vector<1x128xf32>
    %35 = vector.broadcast %34 : vector<1x128xf32> to vector<16x128xf32>
    %36 = arith.addf %32, %35 : vector<16x128xf32>
    %c2 = arith.constant 2 : index
    %c0_22 = arith.constant 0 : index
    %c0_23 = arith.constant 0 : index
    %37 = vector.load %arg5[%c2, %c0_22, %c0_23] : memref<4x128x128xbf16, #tpu.memory_space<vmem>>, vector<1x128x128xbf16>
    %38 = vector.shape_cast %37 : vector<1x128x128xbf16> to vector<128x128xbf16>
    %cst_24 = arith.constant dense<0.000000e+00> : vector<16x128xf32>
    %39 = tpu.matmul %21, %38, %cst_24 {dimension_numbers = #tpu.dot_dimension_numbers<[1], [0], [0], [1], [0, 0, 1, 1], [], []>} : vector<16x128xbf16>, vector<128x128xbf16>, vector<16x128xf32> -> vector<16x128xf32>
    %c2_25 = arith.constant 2 : index
    %c0_26 = arith.constant 0 : index
    %c0_27 = arith.constant 0 : index
    %40 = vector.load %arg6[%c2_25, %c0_26, %c0_27] : memref<4x1x128xf32, #tpu.memory_space<vmem>>, vector<1x1x128xf32>
    %41 = vector.shape_cast %40 : vector<1x1x128xf32> to vector<1x128xf32>
    %42 = vector.broadcast %41 : vector<1x128xf32> to vector<16x128xf32>
    %43 = arith.addf %39, %42 : vector<16x128xf32>
    %44 = vector.extract_strided_slice %29 {offsets = [0, 0], sizes = [8, 32], strides = [1, 1]} : vector<8x128xf32> to vector<8x32xf32>
    %45 = vector.extract_strided_slice %29 {offsets = [0, 32], sizes = [8, 32], strides = [1, 1]} : vector<8x128xf32> to vector<8x32xf32>
    %46 = vector.extract_strided_slice %29 {offsets = [0, 64], sizes = [8, 32], strides = [1, 1]} : vector<8x128xf32> to vector<8x32xf32>
    %47 = vector.extract_strided_slice %29 {offsets = [0, 96], sizes = [8, 32], strides = [1, 1]} : vector<8x128xf32> to vector<8x32xf32>
    %48 = vector.shape_cast %44 : vector<8x32xf32> to vector<1x8x32xf32>
    %49 = vector.shape_cast %45 : vector<8x32xf32> to vector<1x8x32xf32>
    %50 = vector.shape_cast %46 : vector<8x32xf32> to vector<1x8x32xf32>
    %51 = vector.shape_cast %47 : vector<8x32xf32> to vector<1x8x32xf32>
    %52 = tpu.concatenate %48, %49, %50, %51 in 0 : vector<1x8x32xf32>, vector<1x8x32xf32>, vector<1x8x32xf32>, vector<1x8x32xf32> -> vector<4x8x32xf32>
    %53 = arith.truncf %52 : vector<4x8x32xf32> to vector<4x8x32xbf16>
    %54 = vector.extract_strided_slice %36 {offsets = [0, 0], sizes = [16, 32], strides = [1, 1]} : vector<16x128xf32> to vector<16x32xf32>
    %55 = vector.extract_strided_slice %36 {offsets = [0, 32], sizes = [16, 32], strides = [1, 1]} : vector<16x128xf32> to vector<16x32xf32>
    %56 = vector.extract_strided_slice %36 {offsets = [0, 64], sizes = [16, 32], strides = [1, 1]} : vector<16x128xf32> to vector<16x32xf32>
    %57 = vector.extract_strided_slice %36 {offsets = [0, 96], sizes = [16, 32], strides = [1, 1]} : vector<16x128xf32> to vector<16x32xf32>
    %58 = vector.shape_cast %54 : vector<16x32xf32> to vector<1x16x32xf32>
    %59 = vector.shape_cast %55 : vector<16x32xf32> to vector<1x16x32xf32>
    %60 = vector.shape_cast %56 : vector<16x32xf32> to vector<1x16x32xf32>
    %61 = vector.shape_cast %57 : vector<16x32xf32> to vector<1x16x32xf32>
    %62 = tpu.concatenate %58, %59, %60, %61 in 0 : vector<1x16x32xf32>, vector<1x16x32xf32>, vector<1x16x32xf32>, vector<1x16x32xf32> -> vector<4x16x32xf32>
    %63 = arith.truncf %62 : vector<4x16x32xf32> to vector<4x16x32xbf16>
    %64 = vector.extract_strided_slice %43 {offsets = [0, 0], sizes = [16, 32], strides = [1, 1]} : vector<16x128xf32> to vector<16x32xf32>
    %65 = vector.extract_strided_slice %43 {offsets = [0, 32], sizes = [16, 32], strides = [1, 1]} : vector<16x128xf32> to vector<16x32xf32>
    %66 = vector.extract_strided_slice %43 {offsets = [0, 64], sizes = [16, 32], strides = [1, 1]} : vector<16x128xf32> to vector<16x32xf32>
    %67 = vector.extract_strided_slice %43 {offsets = [0, 96], sizes = [16, 32], strides = [1, 1]} : vector<16x128xf32> to vector<16x32xf32>
    %68 = vector.shape_cast %64 : vector<16x32xf32> to vector<1x16x32xf32>
    %69 = vector.shape_cast %65 : vector<16x32xf32> to vector<1x16x32xf32>
    %70 = vector.shape_cast %66 : vector<16x32xf32> to vector<1x16x32xf32>
    %71 = vector.shape_cast %67 : vector<16x32xf32> to vector<1x16x32xf32>
    %72 = tpu.concatenate %68, %69, %70, %71 in 0 : vector<1x16x32xf32>, vector<1x16x32xf32>, vector<1x16x32xf32>, vector<1x16x32xf32> -> vector<4x16x32xf32>
    %73 = arith.truncf %72 : vector<4x16x32xf32> to vector<4x16x32xbf16>
    "tpu.trace_start"() <{level = 10 : i32, message = "hqd,hkd->hqk"}> : () -> ()
    %cst_28 = arith.constant dense<0.000000e+00> : vector<4x8x16xf32>
    %74 = tpu.matmul %53, %63, %cst_28 {dimension_numbers = #tpu.dot_dimension_numbers<[2], [2], [1], [1], [0, 0, 0, 1, 1, 1], [0], [0]>} : vector<4x8x32xbf16>, vector<4x16x32xbf16>, vector<4x8x16xf32> -> vector<4x8x16xf32>
    "tpu.trace_stop"() : () -> ()
    %cst_29 = arith.constant 0.176776692 : f32
    %75 = vector.broadcast %cst_29 : f32 to vector<4x8x16xf32>
    %76 = arith.mulf %74, %75 : vector<4x8x16xf32>
    %77 = vector.shape_cast %15 : vector<8x16xi1> to vector<1x8x16xi1>
    %78 = vector.shape_cast %77 : vector<1x8x16xi1> to vector<1x8x16xi1>
    %79 = vector.broadcast %78 : vector<1x8x16xi1> to vector<4x8x16xi1>
    %cst_30 = arith.constant -1.000000e+09 : f32
    %80 = vector.broadcast %cst_30 : f32 to vector<4x8x16xf32>
    %81 = arith.select %79, %76, %80 : vector<4x8x16xi1>, vector<4x8x16xf32>
    %cst_31 = arith.constant dense<0xFF800000> : vector<4x8xf32>
    %82 = vector.multi_reduction <maximumf>, %81, %cst_31 [2] : vector<4x8x16xf32> to vector<4x8xf32>
    %83 = vector.shape_cast %82 : vector<4x8xf32> to vector<4x8x1xf32>
    %84 = vector.broadcast %83 : vector<4x8x1xf32> to vector<4x8x16xf32>
    %85 = arith.subf %81, %84 : vector<4x8x16xf32>
    %86 = math.exp %85 : vector<4x8x16xf32>
    %cst_32 = arith.constant dense<0.000000e+00> : vector<4x8xf32>
    %87 = vector.multi_reduction <add>, %86, %cst_32 [2] : vector<4x8x16xf32> to vector<4x8xf32>
    %88 = vector.shape_cast %87 : vector<4x8xf32> to vector<4x8x1xf32>
    %89 = tpu.reciprocal %88 {approx = true} : vector<4x8x1xf32> -> vector<4x8x1xf32>
    %90 = vector.broadcast %89 : vector<4x8x1xf32> to vector<4x8x16xf32>
    %91 = arith.mulf %86, %90 : vector<4x8x16xf32>
    %92 = arith.truncf %91 : vector<4x8x16xf32> to vector<4x8x16xbf16>
    "tpu.trace_start"() <{level = 10 : i32, message = "hqk,hkd->hqd"}> : () -> ()
    %cst_33 = arith.constant dense<0.000000e+00> : vector<4x8x32xf32>
    %93 = tpu.matmul %92, %73, %cst_33 {dimension_numbers = #tpu.dot_dimension_numbers<[2], [1], [1], [2], [0, 0, 0, 1, 1, 2], [0], [0]>} : vector<4x8x16xbf16>, vector<4x16x32xbf16>, vector<4x8x32xf32> -> vector<4x8x32xf32>
    "tpu.trace_stop"() : () -> ()
    %94 = vector.extract_strided_slice %93 {offsets = [0, 0, 0], sizes = [1, 8, 32], strides = [1, 1, 1]} : vector<4x8x32xf32> to vector<1x8x32xf32>
    %95 = vector.shape_cast %94 : vector<1x8x32xf32> to vector<8x32xf32>
    %96 = vector.extract_strided_slice %93 {offsets = [1, 0, 0], sizes = [1, 8, 32], strides = [1, 1, 1]} : vector<4x8x32xf32> to vector<1x8x32xf32>
    %97 = vector.shape_cast %96 : vector<1x8x32xf32> to vector<8x32xf32>
    %98 = vector.extract_strided_slice %93 {offsets = [2, 0, 0], sizes = [1, 8, 32], strides = [1, 1, 1]} : vector<4x8x32xf32> to vector<1x8x32xf32>
    %99 = vector.shape_cast %98 : vector<1x8x32xf32> to vector<8x32xf32>
    %100 = vector.extract_strided_slice %93 {offsets = [3, 0, 0], sizes = [1, 8, 32], strides = [1, 1, 1]} : vector<4x8x32xf32> to vector<1x8x32xf32>
    %101 = vector.shape_cast %100 : vector<1x8x32xf32> to vector<8x32xf32>
    %102 = tpu.concatenate %95, %97, %99, %101 in 1 : vector<8x32xf32>, vector<8x32xf32>, vector<8x32xf32>, vector<8x32xf32> -> vector<8x128xf32>
    %103 = arith.truncf %102 : vector<8x128xf32> to vector<8x128xbf16>
    %c3 = arith.constant 3 : index
    %c0_34 = arith.constant 0 : index
    %c0_35 = arith.constant 0 : index
    %104 = vector.load %arg5[%c3, %c0_34, %c0_35] : memref<4x128x128xbf16, #tpu.memory_space<vmem>>, vector<1x128x128xbf16>
    %105 = vector.shape_cast %104 : vector<1x128x128xbf16> to vector<128x128xbf16>
    %cst_36 = arith.constant dense<0.000000e+00> : vector<8x128xf32>
    %106 = tpu.matmul %103, %105, %cst_36 {dimension_numbers = #tpu.dot_dimension_numbers<[1], [0], [0], [1], [0, 0, 1, 1], [], []>} : vector<8x128xbf16>, vector<128x128xbf16>, vector<8x128xf32> -> vector<8x128xf32>
    %c3_37 = arith.constant 3 : index
    %c0_38 = arith.constant 0 : index
    %c0_39 = arith.constant 0 : index
    %107 = vector.load %arg6[%c3_37, %c0_38, %c0_39] : memref<4x1x128xf32, #tpu.memory_space<vmem>>, vector<1x1x128xf32>
    %108 = vector.shape_cast %107 : vector<1x1x128xf32> to vector<1x128xf32>
    %109 = vector.broadcast %108 : vector<1x128xf32> to vector<8x128xf32>
    %110 = arith.addf %106, %109 : vector<8x128xf32>
    %cst_40 = arith.constant 1.000000e+00 : f32
    %111 = vector.broadcast %cst_40 : f32 to vector<8x128xf32>
    %112 = arith.mulf %4, %111 : vector<8x128xf32>
    %113 = arith.addf %110, %112 : vector<8x128xf32>
    %114 = vector.extract_strided_slice %10 {offsets = [0, 0], sizes = [1, 128], strides = [1, 1]} : vector<3x128xf32> to vector<1x128xf32>
    %115 = arith.mulf %113, %113 : vector<8x128xf32>
    %cst_41 = arith.constant dense<0.000000e+00> : vector<8xf32>
    %116 = vector.multi_reduction <add>, %115, %cst_41 [1] : vector<8x128xf32> to vector<8xf32>
    %117 = vector.shape_cast %116 : vector<8xf32> to vector<8x1xf32>
    %cst_42 = arith.constant 1.280000e+02 : f32
    %118 = vector.broadcast %cst_42 : f32 to vector<8x1xf32>
    %119 = arith.divf %117, %118 : vector<8x1xf32>
    %cst_43 = arith.constant 9.99999997E-7 : f32
    %120 = vector.broadcast %cst_43 : f32 to vector<8x1xf32>
    %121 = arith.addf %119, %120 : vector<8x1xf32>
    %122 = math.rsqrt %121 : vector<8x1xf32>
    %123 = vector.broadcast %122 : vector<8x1xf32> to vector<8x128xf32>
    %124 = arith.mulf %113, %123 : vector<8x128xf32>
    %125 = vector.broadcast %114 : vector<1x128xf32> to vector<8x128xf32>
    %126 = arith.mulf %124, %125 : vector<8x128xf32>
    %127 = arith.truncf %4 : vector<8x128xf32> to vector<8x128xbf16>
    %c0_44 = arith.constant 0 : index
    %c0_45 = arith.constant 0 : index
    %c0_46 = arith.constant 0 : index
    %128 = vector.load %arg7[%c0_44, %c0_45, %c0_46] : memref<4x128x128xbf16, #tpu.memory_space<vmem>>, vector<1x128x128xbf16>
    %129 = vector.shape_cast %128 : vector<1x128x128xbf16> to vector<128x128xbf16>
    %cst_47 = arith.constant dense<0.000000e+00> : vector<8x128xf32>
    %130 = tpu.matmul %127, %129, %cst_47 {dimension_numbers = #tpu.dot_dimension_numbers<[1], [0], [0], [1], [0, 0, 1, 1], [], []>} : vector<8x128xbf16>, vector<128x128xbf16>, vector<8x128xf32> -> vector<8x128xf32>
    %c0_48 = arith.constant 0 : index
    %c0_49 = arith.constant 0 : index
    %c0_50 = arith.constant 0 : index
    %131 = vector.load %arg8[%c0_48, %c0_49, %c0_50] : memref<4x1x128xf32, #tpu.memory_space<vmem>>, vector<1x1x128xf32>
    %132 = vector.shape_cast %131 : vector<1x1x128xf32> to vector<1x128xf32>
    %133 = vector.broadcast %132 : vector<1x128xf32> to vector<8x128xf32>
    %134 = arith.addf %130, %133 : vector<8x128xf32>
    %c1_51 = arith.constant 1 : index
    %c0_52 = arith.constant 0 : index
    %c0_53 = arith.constant 0 : index
    %135 = vector.load %arg7[%c1_51, %c0_52, %c0_53] : memref<4x128x128xbf16, #tpu.memory_space<vmem>>, vector<1x128x128xbf16>
    %136 = vector.shape_cast %135 : vector<1x128x128xbf16> to vector<128x128xbf16>
    %cst_54 = arith.constant dense<0.000000e+00> : vector<16x128xf32>
    %137 = tpu.matmul %8, %136, %cst_54 {dimension_numbers = #tpu.dot_dimension_numbers<[1], [0], [0], [1], [0, 0, 1, 1], [], []>} : vector<16x128xbf16>, vector<128x128xbf16>, vector<16x128xf32> -> vector<16x128xf32>
    %c1_55 = arith.constant 1 : index
    %c0_56 = arith.constant 0 : index
    %c0_57 = arith.constant 0 : index
    %138 = vector.load %arg8[%c1_55, %c0_56, %c0_57] : memref<4x1x128xf32, #tpu.memory_space<vmem>>, vector<1x1x128xf32>
    %139 = vector.shape_cast %138 : vector<1x1x128xf32> to vector<1x128xf32>
    %140 = vector.broadcast %139 : vector<1x128xf32> to vector<16x128xf32>
    %141 = arith.addf %137, %140 : vector<16x128xf32>
    %c2_58 = arith.constant 2 : index
    %c0_59 = arith.constant 0 : index
    %c0_60 = arith.constant 0 : index
    %142 = vector.load %arg7[%c2_58, %c0_59, %c0_60] : memref<4x128x128xbf16, #tpu.memory_space<vmem>>, vector<1x128x128xbf16>
    %143 = vector.shape_cast %142 : vector<1x128x128xbf16> to vector<128x128xbf16>
    %cst_61 = arith.constant dense<0.000000e+00> : vector<16x128xf32>
    %144 = tpu.matmul %8, %143, %cst_61 {dimension_numbers = #tpu.dot_dimension_numbers<[1], [0], [0], [1], [0, 0, 1, 1], [], []>} : vector<16x128xbf16>, vector<128x128xbf16>, vector<16x128xf32> -> vector<16x128xf32>
    %c2_62 = arith.constant 2 : index
    %c0_63 = arith.constant 0 : index
    %c0_64 = arith.constant 0 : index
    %145 = vector.load %arg8[%c2_62, %c0_63, %c0_64] : memref<4x1x128xf32, #tpu.memory_space<vmem>>, vector<1x1x128xf32>
    %146 = vector.shape_cast %145 : vector<1x1x128xf32> to vector<1x128xf32>
    %147 = vector.broadcast %146 : vector<1x128xf32> to vector<16x128xf32>
    %148 = arith.addf %144, %147 : vector<16x128xf32>
    %149 = vector.extract_strided_slice %134 {offsets = [0, 0], sizes = [8, 32], strides = [1, 1]} : vector<8x128xf32> to vector<8x32xf32>
    %150 = vector.extract_strided_slice %134 {offsets = [0, 32], sizes = [8, 32], strides = [1, 1]} : vector<8x128xf32> to vector<8x32xf32>
    %151 = vector.extract_strided_slice %134 {offsets = [0, 64], sizes = [8, 32], strides = [1, 1]} : vector<8x128xf32> to vector<8x32xf32>
    %152 = vector.extract_strided_slice %134 {offsets = [0, 96], sizes = [8, 32], strides = [1, 1]} : vector<8x128xf32> to vector<8x32xf32>
    %153 = vector.shape_cast %149 : vector<8x32xf32> to vector<1x8x32xf32>
    %154 = vector.shape_cast %150 : vector<8x32xf32> to vector<1x8x32xf32>
    %155 = vector.shape_cast %151 : vector<8x32xf32> to vector<1x8x32xf32>
    %156 = vector.shape_cast %152 : vector<8x32xf32> to vector<1x8x32xf32>
    %157 = tpu.concatenate %153, %154, %155, %156 in 0 : vector<1x8x32xf32>, vector<1x8x32xf32>, vector<1x8x32xf32>, vector<1x8x32xf32> -> vector<4x8x32xf32>
    %158 = arith.truncf %157 : vector<4x8x32xf32> to vector<4x8x32xbf16>
    %159 = vector.extract_strided_slice %141 {offsets = [0, 0], sizes = [16, 32], strides = [1, 1]} : vector<16x128xf32> to vector<16x32xf32>
    %160 = vector.extract_strided_slice %141 {offsets = [0, 32], sizes = [16, 32], strides = [1, 1]} : vector<16x128xf32> to vector<16x32xf32>
    %161 = vector.extract_strided_slice %141 {offsets = [0, 64], sizes = [16, 32], strides = [1, 1]} : vector<16x128xf32> to vector<16x32xf32>
    %162 = vector.extract_strided_slice %141 {offsets = [0, 96], sizes = [16, 32], strides = [1, 1]} : vector<16x128xf32> to vector<16x32xf32>
    %163 = vector.shape_cast %159 : vector<16x32xf32> to vector<1x16x32xf32>
    %164 = vector.shape_cast %160 : vector<16x32xf32> to vector<1x16x32xf32>
    %165 = vector.shape_cast %161 : vector<16x32xf32> to vector<1x16x32xf32>
    %166 = vector.shape_cast %162 : vector<16x32xf32> to vector<1x16x32xf32>
    %167 = tpu.concatenate %163, %164, %165, %166 in 0 : vector<1x16x32xf32>, vector<1x16x32xf32>, vector<1x16x32xf32>, vector<1x16x32xf32> -> vector<4x16x32xf32>
    %168 = arith.truncf %167 : vector<4x16x32xf32> to vector<4x16x32xbf16>
    %169 = vector.extract_strided_slice %148 {offsets = [0, 0], sizes = [16, 32], strides = [1, 1]} : vector<16x128xf32> to vector<16x32xf32>
    %170 = vector.extract_strided_slice %148 {offsets = [0, 32], sizes = [16, 32], strides = [1, 1]} : vector<16x128xf32> to vector<16x32xf32>
    %171 = vector.extract_strided_slice %148 {offsets = [0, 64], sizes = [16, 32], strides = [1, 1]} : vector<16x128xf32> to vector<16x32xf32>
    %172 = vector.extract_strided_slice %148 {offsets = [0, 96], sizes = [16, 32], strides = [1, 1]} : vector<16x128xf32> to vector<16x32xf32>
    %173 = vector.shape_cast %169 : vector<16x32xf32> to vector<1x16x32xf32>
    %174 = vector.shape_cast %170 : vector<16x32xf32> to vector<1x16x32xf32>
    %175 = vector.shape_cast %171 : vector<16x32xf32> to vector<1x16x32xf32>
    %176 = vector.shape_cast %172 : vector<16x32xf32> to vector<1x16x32xf32>
    %177 = tpu.concatenate %173, %174, %175, %176 in 0 : vector<1x16x32xf32>, vector<1x16x32xf32>, vector<1x16x32xf32>, vector<1x16x32xf32> -> vector<4x16x32xf32>
    %178 = arith.truncf %177 : vector<4x16x32xf32> to vector<4x16x32xbf16>
    "tpu.trace_start"() <{level = 10 : i32, message = "hqd,hkd->hqk"}> : () -> ()
    %cst_65 = arith.constant dense<0.000000e+00> : vector<4x8x16xf32>
    %179 = tpu.matmul %158, %168, %cst_65 {dimension_numbers = #tpu.dot_dimension_numbers<[2], [2], [1], [1], [0, 0, 0, 1, 1, 1], [0], [0]>} : vector<4x8x32xbf16>, vector<4x16x32xbf16>, vector<4x8x16xf32> -> vector<4x8x16xf32>
    "tpu.trace_stop"() : () -> ()
    %cst_66 = arith.constant 0.176776692 : f32
    %180 = vector.broadcast %cst_66 : f32 to vector<4x8x16xf32>
    %181 = arith.mulf %179, %180 : vector<4x8x16xf32>
    %182 = vector.shape_cast %20 : vector<8x16xi1> to vector<1x8x16xi1>
    %183 = vector.shape_cast %182 : vector<1x8x16xi1> to vector<1x8x16xi1>
    %184 = vector.broadcast %183 : vector<1x8x16xi1> to vector<4x8x16xi1>
    %cst_67 = arith.constant -1.000000e+09 : f32
    %185 = vector.broadcast %cst_67 : f32 to vector<4x8x16xf32>
    %186 = arith.select %184, %181, %185 : vector<4x8x16xi1>, vector<4x8x16xf32>
    %cst_68 = arith.constant dense<0xFF800000> : vector<4x8xf32>
    %187 = vector.multi_reduction <maximumf>, %186, %cst_68 [2] : vector<4x8x16xf32> to vector<4x8xf32>
    %188 = vector.shape_cast %187 : vector<4x8xf32> to vector<4x8x1xf32>
    %189 = vector.broadcast %188 : vector<4x8x1xf32> to vector<4x8x16xf32>
    %190 = arith.subf %186, %189 : vector<4x8x16xf32>
    %191 = math.exp %190 : vector<4x8x16xf32>
    %cst_69 = arith.constant dense<0.000000e+00> : vector<4x8xf32>
    %192 = vector.multi_reduction <add>, %191, %cst_69 [2] : vector<4x8x16xf32> to vector<4x8xf32>
    %193 = vector.shape_cast %192 : vector<4x8xf32> to vector<4x8x1xf32>
    %194 = tpu.reciprocal %193 {approx = true} : vector<4x8x1xf32> -> vector<4x8x1xf32>
    %195 = vector.broadcast %194 : vector<4x8x1xf32> to vector<4x8x16xf32>
    %196 = arith.mulf %191, %195 : vector<4x8x16xf32>
    %197 = arith.truncf %196 : vector<4x8x16xf32> to vector<4x8x16xbf16>
    "tpu.trace_start"() <{level = 10 : i32, message = "hqk,hkd->hqd"}> : () -> ()
    %cst_70 = arith.constant dense<0.000000e+00> : vector<4x8x32xf32>
    %198 = tpu.matmul %197, %178, %cst_70 {dimension_numbers = #tpu.dot_dimension_numbers<[2], [1], [1], [2], [0, 0, 0, 1, 1, 2], [0], [0]>} : vector<4x8x16xbf16>, vector<4x16x32xbf16>, vector<4x8x32xf32> -> vector<4x8x32xf32>
    "tpu.trace_stop"() : () -> ()
    %199 = vector.extract_strided_slice %198 {offsets = [0, 0, 0], sizes = [1, 8, 32], strides = [1, 1, 1]} : vector<4x8x32xf32> to vector<1x8x32xf32>
    %200 = vector.shape_cast %199 : vector<1x8x32xf32> to vector<8x32xf32>
    %201 = vector.extract_strided_slice %198 {offsets = [1, 0, 0], sizes = [1, 8, 32], strides = [1, 1, 1]} : vector<4x8x32xf32> to vector<1x8x32xf32>
    %202 = vector.shape_cast %201 : vector<1x8x32xf32> to vector<8x32xf32>
    %203 = vector.extract_strided_slice %198 {offsets = [2, 0, 0], sizes = [1, 8, 32], strides = [1, 1, 1]} : vector<4x8x32xf32> to vector<1x8x32xf32>
    %204 = vector.shape_cast %203 : vector<1x8x32xf32> to vector<8x32xf32>
    %205 = vector.extract_strided_slice %198 {offsets = [3, 0, 0], sizes = [1, 8, 32], strides = [1, 1, 1]} : vector<4x8x32xf32> to vector<1x8x32xf32>
    %206 = vector.shape_cast %205 : vector<1x8x32xf32> to vector<8x32xf32>
    %207 = tpu.concatenate %200, %202, %204, %206 in 1 : vector<8x32xf32>, vector<8x32xf32>, vector<8x32xf32>, vector<8x32xf32> -> vector<8x128xf32>
    %208 = arith.truncf %207 : vector<8x128xf32> to vector<8x128xbf16>
    %c3_71 = arith.constant 3 : index
    %c0_72 = arith.constant 0 : index
    %c0_73 = arith.constant 0 : index
    %209 = vector.load %arg7[%c3_71, %c0_72, %c0_73] : memref<4x128x128xbf16, #tpu.memory_space<vmem>>, vector<1x128x128xbf16>
    %210 = vector.shape_cast %209 : vector<1x128x128xbf16> to vector<128x128xbf16>
    %cst_74 = arith.constant dense<0.000000e+00> : vector<8x128xf32>
    %211 = tpu.matmul %208, %210, %cst_74 {dimension_numbers = #tpu.dot_dimension_numbers<[1], [0], [0], [1], [0, 0, 1, 1], [], []>} : vector<8x128xbf16>, vector<128x128xbf16>, vector<8x128xf32> -> vector<8x128xf32>
    %c3_75 = arith.constant 3 : index
    %c0_76 = arith.constant 0 : index
    %c0_77 = arith.constant 0 : index
    %212 = vector.load %arg8[%c3_75, %c0_76, %c0_77] : memref<4x1x128xf32, #tpu.memory_space<vmem>>, vector<1x1x128xf32>
    %213 = vector.shape_cast %212 : vector<1x1x128xf32> to vector<1x128xf32>
    %214 = vector.broadcast %213 : vector<1x128xf32> to vector<8x128xf32>
    %215 = arith.addf %211, %214 : vector<8x128xf32>
    %216 = arith.addf %215, %126 : vector<8x128xf32>
    %217 = vector.extract_strided_slice %10 {offsets = [1, 0], sizes = [1, 128], strides = [1, 1]} : vector<3x128xf32> to vector<1x128xf32>
    %218 = arith.mulf %216, %216 : vector<8x128xf32>
    %cst_78 = arith.constant dense<0.000000e+00> : vector<8xf32>
    %219 = vector.multi_reduction <add>, %218, %cst_78 [1] : vector<8x128xf32> to vector<8xf32>
    %220 = vector.shape_cast %219 : vector<8xf32> to vector<8x1xf32>
    %cst_79 = arith.constant 1.280000e+02 : f32
    %221 = vector.broadcast %cst_79 : f32 to vector<8x1xf32>
    %222 = arith.divf %220, %221 : vector<8x1xf32>
    %cst_80 = arith.constant 9.99999997E-7 : f32
    %223 = vector.broadcast %cst_80 : f32 to vector<8x1xf32>
    %224 = arith.addf %222, %223 : vector<8x1xf32>
    %225 = math.rsqrt %224 : vector<8x1xf32>
    %226 = vector.broadcast %225 : vector<8x1xf32> to vector<8x128xf32>
    %227 = arith.mulf %216, %226 : vector<8x128xf32>
    %228 = vector.broadcast %217 : vector<1x128xf32> to vector<8x128xf32>
    %229 = arith.mulf %227, %228 : vector<8x128xf32>
    %230 = arith.truncf %229 : vector<8x128xf32> to vector<8x128xbf16>
    %c0_81 = arith.constant 0 : index
    %c0_82 = arith.constant 0 : index
    %231 = vector.load %arg9[%c0_81, %c0_82] : memref<128x512xbf16, #tpu.memory_space<vmem>>, vector<128x512xbf16>
    %cst_83 = arith.constant dense<0.000000e+00> : vector<8x512xf32>
    %232 = tpu.matmul %230, %231, %cst_83 {dimension_numbers = #tpu.dot_dimension_numbers<[1], [0], [0], [1], [0, 0, 1, 1], [], []>} : vector<8x128xbf16>, vector<128x512xbf16>, vector<8x512xf32> -> vector<8x512xf32>
    %c0_84 = arith.constant 0 : index
    %c0_85 = arith.constant 0 : index
    %233 = vector.load %arg10[%c0_84, %c0_85] : memref<1x512xf32, #tpu.memory_space<vmem>>, vector<1x512xf32>
    %234 = vector.broadcast %233 : vector<1x512xf32> to vector<8x512xf32>
    %235 = arith.addf %232, %234 : vector<8x512xf32>
    %236 = vector.extract_strided_slice %235 {offsets = [0, 0], sizes = [8, 256], strides = [1, 1]} : vector<8x512xf32> to vector<8x256xf32>
    %237 = vector.extract_strided_slice %235 {offsets = [0, 256], sizes = [8, 256], strides = [1, 1]} : vector<8x512xf32> to vector<8x256xf32>
    %238 = arith.negf %237 : vector<8x256xf32>
    %239 = math.exp %238 : vector<8x256xf32>
    %cst_86 = arith.constant 1.000000e+00 : f32
    %240 = vector.broadcast %cst_86 : f32 to vector<8x256xf32>
    %241 = arith.addf %240, %239 : vector<8x256xf32>
    %242 = arith.divf %240, %241 : vector<8x256xf32>
    %243 = arith.mulf %236, %242 : vector<8x256xf32>
    %244 = arith.truncf %243 : vector<8x256xf32> to vector<8x256xbf16>
    %c0_87 = arith.constant 0 : index
    %c0_88 = arith.constant 0 : index
    %245 = vector.load %arg11[%c0_87, %c0_88] : memref<256x128xbf16, #tpu.memory_space<vmem>>, vector<256x128xbf16>
    %cst_89 = arith.constant dense<0.000000e+00> : vector<8x128xf32>
    %246 = tpu.matmul %244, %245, %cst_89 {dimension_numbers = #tpu.dot_dimension_numbers<[1], [0], [0], [1], [0, 0, 1, 1], [], []>} : vector<8x256xbf16>, vector<256x128xbf16>, vector<8x128xf32> -> vector<8x128xf32>
    %c0_90 = arith.constant 0 : index
    %c0_91 = arith.constant 0 : index
    %247 = vector.load %arg12[%c0_90, %c0_91] : memref<1x128xf32, #tpu.memory_space<vmem>>, vector<1x128xf32>
    %248 = vector.broadcast %247 : vector<1x128xf32> to vector<8x128xf32>
    %249 = arith.addf %246, %248 : vector<8x128xf32>
    %cst_92 = arith.constant 1.000000e+00 : f32
    %250 = vector.broadcast %cst_92 : f32 to vector<8x128xf32>
    %251 = arith.mulf %229, %250 : vector<8x128xf32>
    %252 = arith.addf %249, %251 : vector<8x128xf32>
    %253 = vector.extract_strided_slice %10 {offsets = [2, 0], sizes = [1, 128], strides = [1, 1]} : vector<3x128xf32> to vector<1x128xf32>
    %254 = arith.mulf %252, %252 : vector<8x128xf32>
    %cst_93 = arith.constant dense<0.000000e+00> : vector<8xf32>
    %255 = vector.multi_reduction <add>, %254, %cst_93 [1] : vector<8x128xf32> to vector<8xf32>
    %256 = vector.shape_cast %255 : vector<8xf32> to vector<8x1xf32>
    %cst_94 = arith.constant 1.280000e+02 : f32
    %257 = vector.broadcast %cst_94 : f32 to vector<8x1xf32>
    %258 = arith.divf %256, %257 : vector<8x1xf32>
    %cst_95 = arith.constant 9.99999997E-7 : f32
    %259 = vector.broadcast %cst_95 : f32 to vector<8x1xf32>
    %260 = arith.addf %258, %259 : vector<8x1xf32>
    %261 = math.rsqrt %260 : vector<8x1xf32>
    %262 = vector.broadcast %261 : vector<8x1xf32> to vector<8x128xf32>
    %263 = arith.mulf %252, %262 : vector<8x128xf32>
    %264 = vector.broadcast %253 : vector<1x128xf32> to vector<8x128xf32>
    %265 = arith.mulf %263, %264 : vector<8x128xf32>
    %c0_96 = arith.constant 0 : index
    %c0_97 = arith.constant 0 : index
    %c0_98 = arith.constant 0 : index
    %266 = vector.load %arg14[%c0_96, %c0_97, %c0_98] : memref<1x8x128xf32, #tpu.memory_space<vmem>>, vector<1x8x128xf32>
    %267 = vector.shape_cast %266 : vector<1x8x128xf32> to vector<8x128xf32>
    %268 = vector.shape_cast %265 : vector<8x128xf32> to vector<1x8x128xf32>
    tpu.vector_store %arg14[%c0_96, %c0_97, %c0_98], %268 {strides = array<i32>} : memref<1x8x128xf32, #tpu.memory_space<vmem>>, vector<1x8x128xf32>,
    return
  }
  func.func @transform_0(%arg0: i32, %arg1: i32, %arg2: memref<2xi32, #tpu.memory_space<smem>>) -> (i32, i32, i32) {
    %c0_i32 = arith.constant 0 : i32
    %c0_i32_0 = arith.constant 0 : i32
    %c0_i32_1 = arith.constant 0 : i32
    return %arg0, %c0_i32, %c0_i32_0 : i32, i32, i32
  }
  func.func @transform_1(%arg0: i32, %arg1: i32, %arg2: memref<2xi32, #tpu.memory_space<smem>>) -> (i32, i32, i32) {
    %c0_i32 = arith.constant 0 : i32
    %c0_i32_0 = arith.constant 0 : i32
    %c0_i32_1 = arith.constant 0 : i32
    return %arg0, %c0_i32, %c0_i32_0 : i32, i32, i32
  }
  func.func @transform_2(%arg0: i32, %arg1: i32, %arg2: memref<2xi32, #tpu.memory_space<smem>>) -> (i32, i32, i32) {
    %c0_i32 = arith.constant 0 : i32
    %c0_i32_0 = arith.constant 0 : i32
    %c0_i32_1 = arith.constant 0 : i32
    %c0_i32_2 = arith.constant 0 : i32
    return %c0_i32, %c0_i32_0, %c0_i32_1 : i32, i32, i32
  }
  func.func @transform_3(%arg0: i32, %arg1: i32, %arg2: memref<2xi32, #tpu.memory_space<smem>>) -> (i32, i32, i32) {
    %c0_i32 = arith.constant 0 : i32
    %c0_i32_0 = arith.constant 0 : i32
    %c0_i32_1 = arith.constant 0 : i32
    %c0_i32_2 = arith.constant 0 : i32
    return %c0_i32, %c0_i32_0, %c0_i32_1 : i32, i32, i32
  }
  func.func @transform_4(%arg0: i32, %arg1: i32, %arg2: memref<2xi32, #tpu.memory_space<smem>>) -> (i32, i32, i32) {
    %c0_i32 = arith.constant 0 : i32
    %c0_i32_0 = arith.constant 0 : i32
    %c0_i32_1 = arith.constant 0 : i32
    %c0_i32_2 = arith.constant 0 : i32
    return %c0_i32, %c0_i32_0, %c0_i32_1 : i32, i32, i32
  }
  func.func @transform_5(%arg0: i32, %arg1: i32, %arg2: memref<2xi32, #tpu.memory_space<smem>>) -> (i32, i32, i32) {
    %c0_i32 = arith.constant 0 : i32
    %c0_i32_0 = arith.constant 0 : i32
    %c0_i32_1 = arith.constant 0 : i32
    %c0_i32_2 = arith.constant 0 : i32
    return %c0_i32, %c0_i32_0, %c0_i32_1 : i32, i32, i32
  }
  func.func @transform_6(%arg0: i32, %arg1: i32, %arg2: memref<2xi32, #tpu.memory_space<smem>>) -> (i32, i32) {
    %c0_i32 = arith.constant 0 : i32
    %c0_i32_0 = arith.constant 0 : i32
    %c0_i32_1 = arith.constant 0 : i32
    return %c0_i32, %c0_i32_0 : i32, i32
  }
  func.func @transform_7(%arg0: i32, %arg1: i32, %arg2: memref<2xi32, #tpu.memory_space<smem>>) -> (i32, i32) {
    %c0_i32 = arith.constant 0 : i32
    %c0_i32_0 = arith.constant 0 : i32
    %c0_i32_1 = arith.constant 0 : i32
    return %c0_i32, %c0_i32_0 : i32, i32
  }
  func.func @transform_8(%arg0: i32, %arg1: i32, %arg2: memref<2xi32, #tpu.memory_space<smem>>) -> (i32, i32) {
    %c0_i32 = arith.constant 0 : i32
    %c0_i32_0 = arith.constant 0 : i32
    %c0_i32_1 = arith.constant 0 : i32
    return %c0_i32, %c0_i32_0 : i32, i32
  }
  func.func @transform_9(%arg0: i32, %arg1: i32, %arg2: memref<2xi32, #tpu.memory_space<smem>>) -> (i32, i32) {
    %c0_i32 = arith.constant 0 : i32
    %c0_i32_0 = arith.constant 0 : i32
    %c0_i32_1 = arith.constant 0 : i32
    return %c0_i32, %c0_i32_0 : i32, i32
  }
  func.func @transform_10(%arg0: i32, %arg1: i32, %arg2: memref<2xi32, #tpu.memory_space<smem>>) -> (i32, i32, i32) {
    %c0_i32 = arith.constant 0 : i32
    %c0_i32_0 = arith.constant 0 : i32
    %c0_i32_1 = arith.constant 0 : i32
    return %arg0, %c0_i32, %c0_i32_0 : i32, i32, i32
  }
  func.func @transform_11(%arg0: i32, %arg1: i32, %arg2: memref<2xi32, #tpu.memory_space<smem>>) -> (i32, i32, i32) {
    %c0_i32 = arith.constant 0 : i32
    %c0_i32_0 = arith.constant 0 : i32
    return %arg0, %arg1, %c0_i32 : i32, i32, i32
  }
}

</mosaic_0001>

<bundles_post_ra>
// kernel: tpu_custom_call.1
= control target key start
LH: loop header
LB: loop body
LE: loop exit
PB: predicated region body
PF: predicated region fallthrough
CT: control target
= control target key end

     0   :  { %s5118_s0 = inlined_call_operand.vmem [shape: s32[2], index: 0, kind: input, shape index: {}]   ;;  %s5119_s1 = inlined_call_operand.hbm [shape: f32[2,16,128], index: 1, kind: input, shape index: {}]   ;;  %s5120_s2 = inlined_call_operand.vmem [shape: bf16[2,16,128], index: 2, kind: input, shape index: {}]   ;;  %s5121_s3 = inlined_call_operand.hbm [shape: bf16[4,128,128], index: 3, kind: input, shape index: {}]   ;;  %s5122_s4 = inlined_call_operand.vmem [shape: f32[4,1,128], index: 4, kind: input, shape index: {}]   ;;  %s5123_s5 = inlined_call_operand.hbm [shape: bf16[4,128,128], index: 5, kind: input, shape index: {}]   ;;  %s5124_s6 = inlined_call_operand.vmem [shape: f32[4,1,128], index: 6, kind: input, shape index: {}]   ;;  %s5125_s7 = inlined_call_operand.hbm [shape: bf16[128,512], index: 7, kind: input, shape index: {}]   ;;  %s5126_s8 = inlined_call_operand.vmem [shape: f32[1,512], index: 8, kind: input, shape index: {}]   ;;  %s5127_s9 = inlined_call_operand.hbm [shape: bf16[256,128], index: 9, kind: input, shape index: {}]   ;;  %s5128_s10 = inlined_call_operand.vmem [shape: f32[1,128], index: 10, kind: input, shape index: {}]   ;;  %s5129_s11 = inlined_call_operand.vmem [shape: f32[2,3,128], index: 11, kind: input, shape index: {}]   ;;  %s5130_s12 = inlined_call_operand.hbm [shape: f32[2,16,128], index: 12, kind: output, shape index: {}]  }
   0x1   :  { %5150 = sst [smem:[#allocation25_spill]] %s5120_s2  ;;  %s17_s23 = sshll.u32 %s5118_s0, 4  ;;  %s18_s23 = int_to_ptr.vmem [resolvable:$true] %s17_s23 }
   0x2   :  { %5151 = sst [smem:[#allocation26_spill]] %s5121_s3  ;;  %s4081_s24 = scalar_lea.vmem %s18_s23, 16 }
   0x3   :  { %5152 = sst [smem:[#allocation27_spill]] %s5122_s4  ;;  %p4082_p0 = scmp.ne.s32.totalorder %s18_s23, %s4081_s24 }
   0x4   :  { %5153 = sst [smem:[#allocation28_spill]] %s5124_s6  ;;  %p4086_p1 = scmp.lt.s32.totalorder %s18_s23, %s18_s23 }
   0x5   :  { %5154 = sst [smem:[#allocation29_spill]] %s5126_s8  ;;  %p4087_p2 = scmp.lt.s32.totalorder %s4081_s24, %s4081_s24 }
   0x6   :  { %5155 = sst [smem:[#allocation30_spill]] %s5128_s10 }
   0x7   :  { %5156 = sst [smem:[#allocation31_spill]] %s5129_s11  ;;  %p4088_p3 = por %p4087_p2, %p4086_p1 }
   0x8   :  { %5157 = sst [smem:[#allocation32_spill]] %s5130_s12 }
   0x9   :  { %p4089_p4 = pnand %p4088_p3, %p4082_p0 }
   0xb   :  { %4092 = shalt.err (!%p4089_p4)  }
   0xc   :  { %s4369_s25 = smov [#allocation3]  }
   0xd   :  { %20 = dma.vmem_to_smem %s18_s23, 16, %s4369_s25, [#allocation2] }
   0xe   :  { %4307 = dma.done.wait [#allocation2], 16 }
   0xf   :  { %4308 = vsyncadd [#allocation2], 4294967280 }
  0x10   :  { %22 = sfence }
  0x11   :  { %23 = vsyncpa [#allocation5], 0 }
  0x12   :  { %25 = vsyncpa [#allocation5 + $0x1], 0 }
  0x13   :  { %26 = vsyncpa [#allocation8], 0 }
  0x14   :  { %27 = vsyncpa [#allocation11], 0 }
  0x15   :  { %28 = vsyncpa [#allocation6], 0 }
  0x16   :  { %30 = vsyncpa [#allocation6 + $0x1], 0  ;;  %s4456_s0 = smov 0   ;;  %s4458_s26 = smov 0  }
  0x17   :  { %s4460_s27 = smov 0   ;;  %s4462_s28 = smov 0  }
  0x18   :  { %s4464_s29 = smov 0   ;;  %s4466_s30 = smov 0  }
  0x19   :  { %s4468_s13 = smov 0   ;;  %s4470_s14 = smov 0  }
  0x1a   :  { %s4472_s15 = smov 0   ;;  %s4474_s16 = smov 0  }
  0x1b   :  { %s4476_s17 = smov 0  }
  0x1c LB: > { %5158 = sst [smem:[#allocation19_spill]] %s4327_s0  ;;  %s3132_s18 = sadd.s32 4294967295, %s4367_s17   ;;  %s4367_s17 = sphi %s4476_s17, %s36_s17   ;;  %s4363_s16 = sphi %s4474_s16, %s5206_s16   ;;  %s4359_s15 = sphi %s4472_s15, %s5205_s15   ;;  %s4355_s14 = sphi %s4470_s14, %s5204_s14   ;;  %s4351_s13 = sphi %s4468_s13, %s5203_s13   ;;  %s4347_s30 = sphi %s4466_s30, %s5202_s30   ;;  %s4343_s29 = sphi %s4464_s29, %s5201_s29   ;;  %s4339_s28 = sphi %s4462_s28, %s5200_s28   ;;  %s4335_s27 = sphi %s4460_s27, %s5199_s27   ;;  %s4331_s26 = sphi %s4458_s26, %s5198_s26   ;;  %s4327_s0 = sphi %s4456_s0, %s5197_s0  }
  0x1d   : > { %5159 = sst [smem:[#allocation20_spill]] %s4331_s26  ;;  %s3133_s19 = sadd.s32 4294967294, %s4367_s17  }
  0x1e   : > { %5160 = sst [smem:[#allocation21_spill]] %s4351_s13  ;;  %p68_p5 = scmp.ne.s32.totalorder %s4343_s29, %s4339_s28 }
  0x1f   : > { %5161 = sst [smem:[#allocation22_spill]] %s4355_s14  ;;  %p4512_p6 = scmp.eq.s32.totalorder %s3132_s18, 0 }
  0x20   : > { %p313_p7 = scmp.ne.s32.totalorder %s4335_s27, %s4331_s26  ;;  %p314_p8 = scmp.eq.s32.totalorder %s3132_s18, 3 }
  0x21   : > { %s5162_s20 = scalar_select %p4512_p6, 1, 0 }
  0x22   : > { %p4520_p9 = por %p4512_p6, %p68_p5  ;;  %p319_p10 = scmp.ne.s32.totalorder %s4331_s26, %s4327_s0 }
  0x23   : > { %p4526_p11 = por %p314_p8, %p313_p7  ;;  %p320_p12 = scmp.eq.s32.totalorder %s3133_s19, 3 }
  0x24   : > { %s5163_s21 = scalar_select %p4520_p9, 1, 0 }
  0x25   : > { %s5164_s22 = scalar_select %p4526_p11, 1, 0 }
  0x26   : > { %p3134_p13 = scmp.ge.s32.totalorder %s4367_s17, 1  ;;  %p327_p0 = scmp.lt.s32.totalorder %s4367_s17, 5 }
  0x27   : > { %5165 = sst [smem:[#allocation23_spill]] %s5164_s22  ;;  %p4532_p1 = por %p320_p12, %p319_p10 }
  0x28   : > { %p4536_p2 = pnand %p3134_p13, %p327_p0  ;;  %s4370_s25 = smov [#allocation7]  }
  0x29   : > { %s5166_s23 = scalar_select %p4532_p1, 1, 0 }
  0x2a   : > { %s5168_s24 = scalar_select %p4536_p2, 1, 0 }
  0x2b   : > { %5167 = sst [smem:[#allocation24_spill]] %s5166_s23  ;;  %s339_s28 = sshll.u32 %s4370_s25, 4  ;;  %s340_s28 = int_to_ptr.vmem [resolvable:$true] %s339_s28 }
  0x2c   : > { %p3709_p3 = pneg %p4536_p2  ;;  %s4371_s19 = smov [#allocation10]  }
  0x2d   : > { %s371_s0 = sshll.u32 %s4371_s19, 4  ;;  %s5170_s3 = sld [smem:[#allocation26_spill]]  ;;  %s4548_s0 = int_to_ptr.vmem [resolvable:$true] %s371_s0 }
  0x2e   : > { %p4544_p4 = pnand %p3709_p3, %p4512_p6 }
  0x30   : > { %p4558_p7 = pneg %p4544_p4 }
  0x33   : > { %s4093_s22 = scalar_lea.hbm %s5170_s3, 4096 }
  0x34   : > { %p4094_p5 = scmp.ne.s32.totalorder %s5170_s3, %s4093_s22  ;;  %p4100_p12 = scmp.lt.u32.totalorder %s4093_s22, %s5170_s3 }
  0x36   : > { %p4096_p8 = pnand %p4558_p7, %p4094_p5 }
  0x38   : > { %p4097_p10 = pneg %p4096_p8 }
  0x3a   : > { %p4102_p13 = pnand %p4100_p12, %p4097_p10 }
  0x3c   : > { %4105 = shalt.err (!%p4102_p13)
}
  0x3d   : > { %s4106_s12 = scalar_lea.vmem %s340_s28, 4096  ;;  %p4114_p11 = scmp.lt.s32.totalorder %s340_s28, %s340_s28 }
  0x3e   : > { %p4107_p0 = scmp.ne.s32.totalorder %s340_s28, %s4106_s12  ;;  %p4115_p6 = scmp.lt.s32.totalorder %s4106_s12, %s4106_s12 }
  0x40   : > { %p4109_p3 = pnand %p4107_p0, %p4558_p7  ;;  %p4116_p9 = por %p4115_p6, %p4114_p11 }
  0x42   : > { %p4110_p1 = pneg %p4109_p3 }
  0x44   : > { %p4117_p2 = pnand %p4116_p9, %p4110_p1 }
  0x46   : > { %4120 = shalt.err (!%p4117_p2)
}
  0x47   : > { %s5144_s10 = smov 64   ;;  %s5146_s26 = smov 4  }
  0x48   : > { %3712 = dma.hbm_to_vmem [thread:$0]  (!%p4544_p4), %s5170_s3, 4096, %s340_s28, [#allocation8], %s5144_s10, %s5144_s10, %s5146_s26  }
  0x49   : > { %s4121_s11 = scalar_lea.hbm %s5125_s7, 4096 }
  0x4a   : > { %p4122_p6 = scmp.ne.s32.totalorder %s5125_s7, %s4121_s11  ;;  %p4128_p1 = scmp.lt.u32.totalorder %s4121_s11, %s5125_s7 }
  0x4c   : > { %p4124_p9 = pnand %p4122_p6, %p4558_p7 }
  0x4e   : > { %p4125_p11 = pneg %p4124_p9 }
  0x50   : > { %p4130_p2 = pnand %p4128_p1, %p4125_p11 }
  0x52   : > { %4133 = shalt.err (!%p4130_p2)
}
  0x53   : > { %s4134_s28 = scalar_lea.vmem %s4548_s0, 4096  ;;  %p4142_p12 = scmp.lt.s32.totalorder %s4548_s0, %s4548_s0 }
  0x54   : > { %p4135_p5 = scmp.ne.s32.totalorder %s4548_s0, %s4134_s28  ;;  %p4143_p13 = scmp.lt.s32.totalorder %s4134_s28, %s4134_s28 }
  0x56   : > { %p4137_p8 = pnand %p4135_p5, %p4558_p7  ;;  %p4144_p0 = por %p4143_p13, %p4142_p12 }
  0x58   : > { %p4138_p10 = pneg %p4137_p8 }
  0x5a   : > { %p4145_p3 = pnand %p4144_p0, %p4138_p10 }
  0x5c   : > { %4148 = shalt.err (!%p4145_p3)
}
  0x5d   : > { %s4374_s6 = smov 256   ;;  %s4375_s2 = smov 16  }
  0x5e   : > { %3718 = dma.hbm_to_vmem [thread:$0]  (!%p4544_p4), %s5125_s7, 4096, %s4548_s0, [#allocation11], %s4374_s6, %s4374_s6, %s4375_s2  }
  0x5f   : > { %s4376_s8 = smov [#allocation9]   ;;  %s4377_s23 = smov [#allocation12]  }
  0x60   : > { %s355_s22 = sshll.u32 %s4376_s8, 4  ;;  %s387_s19 = sshll.u32 %s4377_s23, 4  ;;  %s356_s22 = int_to_ptr.vmem [resolvable:$true] %s355_s22  ;;  %s388_s19 = int_to_ptr.vmem [resolvable:$true] %s387_s19 }
  0x61   : > { %s4149_s10 = scalar_lea.hbm %s5123_s5, 4096 }
  0x62   : > { %p4150_p6 = scmp.ne.s32.totalorder %s5123_s5, %s4149_s10  ;;  %p4156_p1 = scmp.lt.u32.totalorder %s4149_s10, %s5123_s5 }
  0x64   : > { %p4152_p9 = pnand %p4150_p6, %p4558_p7 }
  0x66   : > { %p4153_p11 = pneg %p4152_p9 }
  0x68   : > { %p4158_p2 = pnand %p4156_p1, %p4153_p11 }
  0x6a   : > { %4161 = shalt.err (!%p4158_p2)
}
  0x6b   : > { %s4162_s0 = scalar_lea.vmem %s356_s22, 4096  ;;  %p4170_p12 = scmp.lt.s32.totalorder %s356_s22, %s356_s22 }
  0x6c   : > { %p4163_p5 = scmp.ne.s32.totalorder %s356_s22, %s4162_s0  ;;  %p4171_p13 = scmp.lt.s32.totalorder %s4162_s0, %s4162_s0 }
  0x6e   : > { %p4165_p8 = pnand %p4163_p5, %p4558_p7  ;;  %p4172_p0 = por %p4171_p13, %p4170_p12 }
  0x70   : > { %p4166_p10 = pneg %p4165_p8 }
  0x72   : > { %p4173_p3 = pnand %p4172_p0, %p4166_p10 }
  0x74   : > { %4176 = shalt.err (!%p4173_p3)
}
  0x75   : > { %s5172_s3 = smov 4   ;;  %s5173_s26 = smov 64  }
  0x76   : > { %3715 = dma.hbm_to_vmem [thread:$0]  (!%p4544_p4), %s5123_s5, 4096, %s356_s22, [#allocation8], %s5173_s26, %s5173_s26, %s5172_s3  }
  0x77   : > { %s4177_s2 = scalar_lea.hbm %s5127_s9, 2048 }
  0x78   : > { %p4178_p6 = scmp.ne.s32.totalorder %s5127_s9, %s4177_s2  ;;  %p4184_p1 = scmp.lt.u32.totalorder %s4177_s2, %s5127_s9 }
  0x7a   : > { %p4180_p9 = pnand %p4178_p6, %p4558_p7 }
  0x7c   : > { %p4181_p11 = pneg %p4180_p9 }
  0x7e   : > { %p4186_p2 = pnand %p4184_p1, %p4181_p11 }
  0x80   : > { %4189 = shalt.err (!%p4186_p2)
}
  0x81   : > { %s4190_s12 = scalar_lea.vmem %s388_s19, 2048  ;;  %p4198_p12 = scmp.lt.s32.totalorder %s388_s19, %s388_s19 }
  0x82   : > { %p4191_p5 = scmp.ne.s32.totalorder %s388_s19, %s4190_s12  ;;  %p4199_p13 = scmp.lt.s32.totalorder %s4190_s12, %s4190_s12 }
  0x84   : > { %p4193_p8 = pnand %p4191_p5, %p4558_p7  ;;  %p4200_p0 = por %p4199_p13, %p4198_p12 }
  0x86   : > { %p4194_p10 = pneg %p4193_p8 }
  0x88   : > { %p4201_p3 = pnand %p4200_p0, %p4194_p10 }
  0x8a   : > { %4204 = shalt.err (!%p4201_p3)
}
  0x8b   : > { %3721 = dma.hbm_to_vmem [thread:$0]  (!%p4544_p4), %s5127_s9, 2048, %s388_s19, [#allocation11], %s5173_s26, %s5173_s26, %s5172_s3  }
  0x8c   : > { %s45_s18 = sadd.s32 1, %s4359_s15  ;;  %s48_s25 = sadd.s32 1, %s4363_s16 }
  0x8d   : > { %p46_p7 = scmp.ge.s32.totalorder %s45_s18, 2  ;;  %s55_s0 = sadd.s32 1, %s4347_s30 }
  0x8e   : > { %p62_p6 = scmp.ne.s32.totalorder %s4347_s30, %s4343_s29  ;;  %p63_p9 = scmp.eq.s32.totalorder %s4367_s17, 0 }
  0x8f   : > { %s5208_s18 = smov (%p46_p7, %s45_s18), 0  ;;  %s5210_s25 = smov (!%p46_p7, %s48_s25), %s4363_s16 }
  0x90   : > { %s299_s4 = ssub.s32 %s4359_s15, %s5208_s18  ;;  %p50_p11 = scmp.ge.s32.totalorder %s5210_s25, 2 }
  0x91   : > { %s303_s13 = sadd.s32 1, %s4335_s27  ;;  %p4654_p1 = por %p63_p9, %p62_p6 }
  0x92   : > { %p3734_p4 = scmp.lt.s32.totalorder %s4367_s17, 4  ;;  %s5212_s25 = smov (%p50_p11, %s5210_s25), 0 }
  0x93   : > { %s404_s3 = sand.u32 1, %s4347_s30   ;;  %s3305_s26 = sshll.u32 %s4363_s16, 8 }
  0x94   : > { %s52_s10 = ssub.s32 %s4363_s16, %s5212_s25  ;;  %s3140_s2 = sshll.u32 %s404_s3, 4 }
  0x95   : > { %p53_p2 = scmp.eq.s32.totalorder %s52_s10, 0  ;;  %s300_s6 = sor.u32 %s299_s4, %s52_s10 }
  0x96   : > { %p301_p5 = scmp.eq.s32.totalorder %s300_s6, 0  ;;  %s4674_s12 = scalar_lea.hbm %s5119_s1, %s3305_s26 }
  0x97   : > { %s4666_s11 = scalar_select %p53_p2, %s4347_s30, %s55_s0  }
  0x98   : > { %s4669_s14 = scalar_select %p301_p5, %s4335_s27, %s303_s13  }
  0x99   : > { %s408_s22 = scalar_lea.vmem [#allocation4], %s3140_s2  ;;  %p4680_p8 = pnand %p3734_p4, %p4654_p1 }
  0x9a   : > { %s415_s28 = sshll.u32 %s408_s22, 4  ;;  %s4686_s0 = scalar_lea.sflag [#allocation5], %s404_s3  ;;  %s4684_s28 = int_to_ptr.vmem [resolvable:$true] %s415_s28 }
  0x9b   : > { %s4205_s13 = scalar_lea.hbm %s4674_s12, 256  ;;  %p4207_p12 = pneg %p4680_p8 }
  0x9c   : > { %p4206_p10 = scmp.ne.s32.totalorder %s4674_s12, %s4205_s13  ;;  %s4210_s10 = scalar_lea.hbm %s5119_s1, 512 }
  0x9d   : > { %p4211_p3 = scmp.lt.u32.totalorder %s4674_s12, %s5119_s1  ;;  %p4212_p7 = scmp.lt.u32.totalorder %s4210_s10, %s4205_s13 }
  0x9e   : > { %p4208_p13 = pnand %p4207_p12, %p4206_p10  ;;  %p4214_p9 = scmp.lt.u32.totalorder %s4205_s13, %s4674_s12 }
  0x9f   : > { %p4213_p6 = por %p4212_p7, %p4211_p3 }
  0xa0   : > { %p4209_p0 = pneg %p4208_p13 }
  0xa1   : > { %p4215_p11 = por %p4214_p9, %p4213_p6 }
  0xa3   : > { %p4216_p1 = pnand %p4215_p11, %p4209_p0 }
  0xa5   : > { %4219 = shalt.err (!%p4216_p1)
}
  0xa6   : > { %s4220_s3 = scalar_lea.vmem %s4684_s28, 256  ;;  %s4378_s8 = smov [#allocation4]  }
  0xa7   : > { %p4221_p4 = scmp.ne.s32.totalorder %s4684_s28, %s4220_s3  ;;  %s4225_s23 = sshll.u32 %s4378_s8, 4  ;;  %s4226_s23 = int_to_ptr.vmem [resolvable:$false] %s4225_s23 }
  0xa8   : > { %s4227_s22 = scalar_lea.vmem %s4226_s23, 512  ;;  %p4228_p10 = scmp.lt.s32.totalorder %s4684_s28, %s4226_s23 }
  0xa9   : > { %p4223_p2 = pnand %p4221_p4, %p4207_p12  ;;  %p4229_p13 = scmp.lt.s32.totalorder %s4227_s22, %s4220_s3 }
  0xab   : > { %p4224_p5 = pneg %p4223_p2  ;;  %p4230_p3 = por %p4229_p13, %p4228_p10 }
  0xad   : > { %p4231_p7 = pnand %p4230_p3, %p4224_p5 }
  0xaf   : > { %4234 = shalt.err (!%p4231_p7)
}
  0xb0   : > { %s4379_s13 = smov 128   ;;  %s4380_s19 = smov 8  }
  0xb1   : > { %3725 = dma.hbm_to_vmem [thread:$0]  (!%p4680_p8), %s4674_s12, 256, %s4684_s28, %s4686_s0, %s4379_s13, %s4379_s13, %s4380_s19  }
  0xb2   : > { %p5176_p12 = scmp.ne.s32.totalorder %s5168_s24, 0 }
  0xb3   : > { %s444_s26 = sand.u32 (!%p5176_p12), 1, %s4343_s29   ;;  %p5177_p0 = scmp.ne.s32.totalorder (!%p5176_p12), %s5163_s21, 0 }
  0xb4   : > { %442 = sbr.rel (%p5176_p12) target bundleno = 3718 (0xe86), region = 64  ;;  %s3144_s10 = sshll.u32 (!%p5176_p12), %s444_s26, 4 }
  0xb5   : > { %s445_s6 = scalar_lea.sflag (!%p5176_p12), [#allocation5], %s444_s26  ;;  %s4717_s2 = scalar_lea.vmem (!%p5176_p12), [#allocation4], %s3144_s10 }
  0xbb   : > { %4310 = dma.done.wait (%p5177_p0), %s445_s6, 256  }
  0xbc   : > { %4312 = vsyncadd (%p5177_p0), %s445_s6, 4294967040  ;;  %p5178_p6 = scmp.ne.s32.totalorder %s5162_s20, 0 }
  0xbe   : > { %4314 = dma.done.wait (%p5178_p6), [#allocation8], 8192  }
  0xbf   : > { %4316 = vsyncadd (%p5178_p6), [#allocation8], 4294959104 }
  0xc0   : > { %4318 = dma.done.wait (%p5178_p6), [#allocation11], 6144  }
  0xc1   : > { %4320 = vsyncadd (%p5178_p6), [#allocation11], 4294961152  ;;  %v4381_v0 = vmov 0.0   ;;  %vm4382_vm0 = vmmov 0   ;;  %v3905_v1 = vld [vmem:[#allocation7 + $0x40] sm:$0xff]   ;;  %v3906_v2 = vld [vmem:[#allocation7 + $0x48] sm:$0xff]  }
  0xc2   : > { %3453 = vmatprep.subr.bf16.mxu1 %v4381_v0  ;;  %3433 = vmatprep.subr.bf16.mxu0 %v4381_v0  ;;  %v3907_v3 = vld [vmem:[#allocation7] sm:$0xff]   ;;  %v3909_v4 = vld [vmem:[#allocation7 + $0x8] sm:$0xff]   ;;  %v3908_v5 = vld [vmem:[#allocation7 + $0x50] sm:$0xff]   ;;  %s5179_s20 = sld [smem:[#allocation21_spill]]  ;;  %vm943_vm1 = vcmask 261120   ;;  %s4383_s8 = smov 64  }
  0xc3   : > { %3469 = vmatprep.mubr.msk.bf16.mxu1 %vm4382_vm0, %v4381_v0  ;;  %3449 = vmatprep.mubr.msk.bf16.mxu0 %vm4382_vm0, %v4381_v0  ;;  %v3911_v6 = vld [vmem:[#allocation7 + $0x10] sm:$0xff]   ;;  %v3910_v7 = vld [vmem:[#allocation7 + $0x58] sm:$0xff]   ;;  %v3912_v9 = vld [vmem:[#allocation7 + $0x60] sm:$0xff]   ;;  %s5180_s4 = sld [smem:[#allocation27_spill]]  ;;  %s4384_s23 = smov 96   ;;  %vm1138_vm3 = vcmask 130048  }
  0xc4   : > { %3454 = vmatpush3.bf16.msra.mxu1 %v3905_v1  ;;  %3434 = vmatpush3.bf16.msra.mxu0 %v3907_v3  ;;  %v3913_v8 = vld [vmem:[#allocation7 + $0x18] sm:$0xff]   ;;  %v3915_v10 = vld [vmem:[#allocation7 + $0x20] sm:$0xff]   ;;  %v3914_v11 = vld [vmem:[#allocation7 + $0x68] sm:$0xff]   ;;  %s4385_s22 = smov 32   ;;  %s5181_s26 = sld [smem:[#allocation22_spill]]  ;;  %vm1372_vm4 = vcmask 523264  }
  0xc5   : > { %3455 = vmatprep.subr.bf16.mxu1 %v4381_v0  ;;  %3435 = vmatprep.subr.bf16.mxu0 %v4381_v0  ;;  %v3917_v12 = vld [vmem:[#allocation7 + $0x28] sm:$0xff]   ;;  %v3916_v13 = vld [vmem:[#allocation7 + $0x70] sm:$0xff]   ;;  %v3918_v15 = vld [vmem:[#allocation7 + $0x78] sm:$0xff]   ;;  %s5182_s12 = sld [smem:[#allocation25_spill]]  ;;  %vm1374_vm5 = vcmask 785408   ;;  %s5183_s13 = sld [smem:[#allocation28_spill]] }
  0xc6   : > { %v3919_v14 = vld [vmem:[#allocation7 + $0x30] sm:$0xff]   ;;  %v526_v17 = vld [vmem:[%s4717_s2 + $0x8] sm:$0xff]  ;;  %v3921_v22 = vld [vmem:[#allocation7 + $0x80] sm:$0xff]   ;;  %s5192_s3 = sld [smem:[#allocation32_spill]] }
  0xc7   : > { %v525_v16 = vld [vmem:[%s4717_s2] sm:$0xff]  ;;  %v3920_v18 = vld [vmem:[#allocation7 + $0x38] sm:$0xff]   ;;  %v3922_v23 = vld [vmem:[#allocation7 + $0x88] sm:$0xff]  }
  0xc8   : > { %3456 = vmatpush3.bf16.msra.mxu1 %v3906_v2  ;;  %3436 = vmatpush3.bf16.msra.mxu0 %v3909_v4  ;;  %s3153_s21 = sshll.u32 %s5179_s20, 3  ;;  %v4759_v20 = vpack.c.bf16 %v526_v17, %v525_v16  ;;  %v3923_v24 = vld [vmem:[#allocation7 + $0x90] sm:$0xff]   ;;  %v3924_v28 = vld [vmem:[#allocation7 + $0x98] sm:$0xff]   ;;  %v3925_v37 = vld [vmem:[#allocation7 + $0xa0] sm:$0xff]  }
  0xc9   : > { %3457 = vmatprep.subr.bf16.mxu1 %v4381_v0  ;;  %3437 = vmatprep.subr.bf16.mxu0 %v4381_v0  ;;  %s4752_s24 = scalar_lea.vmem %s4717_s2, %s3153_s21 [#allocation4]  ;;  %v3164_v25 = vld [vmem:[%s5180_s4 + $0x1] ss:$0 sm:$0xff]  ;;  %v3154_v35 = vld [vmem:[%s5180_s4] ss:$0 sm:$0xff]  ;;  %v3926_v43 = vld [vmem:[#allocation7 + $0xa8] sm:$0xff]  }
  0xca   : > { %v524_v19 = vld [vmem:[%s4752_s24] sm:$0xff]  ;;  %v3927_v45 = vld [vmem:[#allocation7 + $0xb0] sm:$0xff]   ;;  %v3928_v46 = vld [vmem:[#allocation7 + $0xb8] sm:$0xff]   ;;  %p512_p8 = scmp.lt.s32.totalorder %s5181_s26, 1 }
  0xcb   : > { %v4762_v21 = vpack.c.bf16 %v524_v19, %v524_v19  ;;  %s5184_s19 = smov %s5183_s13 }
  0xcc   : > { %3458 = vmatpush3.bf16.msra.mxu1 %v3908_v5  ;;  %3438 = vmatpush3.bf16.msra.mxu0 %v3911_v6  ;;  %v530_v5 = vlaneseq  ;;  %s4880_s10 = scalar_select %p512_p8, %s5181_s26, 1 }
  0xcd   : > { %3459 = vmatprep.subr.bf16.mxu1 %v4381_v0  ;;  %3439 = vmatprep.subr.bf16.mxu0 %v4381_v0 }
  0xce   : > { %v4815_v6 = vshrl.u32 %v530_v5, 7  ;;  %s3306_s6 = sshll.u32 %s4880_s10, 3 }
  0xcf   : > { %s4887_s28 = scalar_lea.vmem %s5182_s12, %s3306_s6  ;;  %s5188_s12 = sld [smem:[#allocation29_spill]] }
  0xd0   : > { %3460 = vmatpush3.bf16.msra.mxu1 %v3910_v7  ;;  %3440 = vmatpush3.bf16.msra.mxu0 %v3913_v8  ;;  %v532_v7 = vstv %s3153_s21 }
  0xd1   : > { %3461 = vmatprep.subr.bf16.mxu1 %v4381_v0  ;;  %3441 = vmatprep.subr.bf16.mxu0 %v4381_v0  ;;  %v533_v8 = vadd.s32 %v532_v7, %v4815_v6 }
  0xd4   : > { %3462 = vmatpush3.bf16.msra.mxu1 %v3912_v9  ;;  %3442 = vmatpush3.bf16.msra.mxu0 %v3915_v10  ;;  %v4820_v9 = vand.u32 127, %v530_v5 }
  0xd5   : > { %3463 = vmatprep.subr.bf16.mxu1 %v4381_v0  ;;  %3443 = vmatprep.subr.bf16.mxu0 %v4381_v0 }
  0xd6   : > { %vm536_vm2 = vcmp.ge.s32.totalorder %v533_v8, %v4820_v9 }
  0xd8   : > { %3464 = vmatpush3.bf16.msra.mxu1 %v3914_v11  ;;  %3444 = vmatpush3.bf16.msra.mxu0 %v3917_v12 }
  0xd9   : > { %3465 = vmatprep.subr.bf16.mxu1 %v4381_v0  ;;  %3445 = vmatprep.subr.bf16.mxu0 %v4381_v0 }
  0xdc   : > { %3466 = vmatpush3.bf16.msra.mxu1 %v3916_v13  ;;  %3446 = vmatpush3.bf16.msra.mxu0 %v3919_v14 }
  0xdd   : > { %3467 = vmatprep.subr.bf16.mxu1 %v4381_v0  ;;  %3447 = vmatprep.subr.bf16.mxu0 %v4381_v0 }
  0xe0   : > { %3468 = vmatpush3.bf16.msra.mxu1 %v3918_v15  ;;  %3448 = vmatpush3.bf16.msra.mxu0 %v3920_v18 }
  0xe1   : > { %3493 = vmatprep.subr.bf16.mxu1 %v4381_v0  ;;  %3473 = vmatprep.subr.bf16.mxu0 %v4381_v0 }
  0xe3   : > { %3470 = vmatmul.mubr.bf16.vlgmr.msra.gmra.mrb[0].mxu1 %v4759_v20  ;;  %3450 = vmatmul.mubr.bf16.vlgmr.msra.gmra.mrb[0].mxu0 %v4762_v21 }
  0xe4   : > { %3495 = vmatprep.mubr.msk.bf16.mxu1 %vm4382_vm0, %v4381_v0  ;;  %3489 = vmatprep.mubr.msk.bf16.mxu0 %vm4382_vm0, %v4381_v0 }
  0xe5   : > { %3474 = vmatpush3.bf16.msra.mxu0 %v3921_v22  ;;  %v3174_v22 = vld [vmem:[%s5180_s4 + $0x2] ss:$0 sm:$0xff] }
  0xe6   : > { %3475 = vmatprep.subr.bf16.mxu0 %v4381_v0 }
  0xe9   : > { %3476 = vmatpush3.bf16.msra.mxu0 %v3922_v23 }
  0xea   : > { %3477 = vmatprep.subr.bf16.mxu0 %v4381_v0 }
  0xed   : > { %3478 = vmatpush3.bf16.msra.mxu0 %v3923_v24 }
  0xee   : > { %3479 = vmatprep.subr.bf16.mxu0 %v4381_v0 }
  0xf1   : > { %3480 = vmatpush3.bf16.msra.mxu0 %v3924_v28 }
  0xf2   : > { %3481 = vmatprep.subr.bf16.mxu0 %v4381_v0 }
  0xf5   : > { %3482 = vmatpush3.bf16.msra.mxu0 %v3925_v37 }
  0xf6   : > { %3483 = vmatprep.subr.bf16.mxu0 %v4381_v0 }
  0xf9   : > { %3484 = vmatpush3.bf16.msra.mxu0 %v3926_v43 }
  0xfa   : > { %3485 = vmatprep.subr.bf16.mxu0 %v4381_v0 }
  0xfd   : > { %3486 = vmatpush3.bf16.msra.mxu0 %v3927_v45 }
  0xfe   : > { %3487 = vmatprep.subr.bf16.mxu0 %v4381_v0 }
 0x101   : > { %3488 = vmatpush3.bf16.msra.mxu0 %v3928_v46 }
 0x102   : > { %3517 = vmatprep.subr.bf16.mxu0 %v4381_v0 }
 0x104   : > { %3490 = vmatmul.mubr.bf16.vlgmr.msra.gmra.mrb[4].mxu0 %v4759_v20 }
 0x105   : > { %3519 = vmatprep.mubr.msk.bf16.mxu0 %vm4382_vm0, %v4381_v0 }
 0x1b6   : > { %v760_v26 = vpop.f32.mrb[0].mxu1  ;;  %v647_v30 = vpop.f32.mrb[0].mxu0 }
 0x1b7   : > { %v3471_v27 = vpop.f32.mrb[1].mxu1  ;;  %v761_v31 = vadd.f32 %v3164_v25, %v760_v26  ;;  %v3451_v34 = vpop.f32.mrb[1].mxu0  ;;  %v648_v41 = vadd.f32 %v3154_v35, %v647_v30 }
 0x1b8   : > { %v763_v29 = vpop.f32.mrb[2].mxu1  ;;  %v650_v36 = vpop.f32.mrb[2].mxu0 }
 0x1b9   : > { %v764_v32 = vadd.f32 %v3164_v25, %v763_v29  ;;  %v3472_v33 = vpop.f32.mrb[3].mxu1  ;;  %v3452_v40 = vpop.f32.mrb[3].mxu0  ;;  %v891_v44 = vpack.c.bf16 %v648_v41, %v648_v41 }
 0x1bb   : > { %v3850_v38 = vpack.i.bf16 %v764_v32, %v761_v31  ;;  %v915_v39 = vpack.c.bf16 %v764_v32, %v761_v31 }
 0x1bd   : > { %3851 = vrot.lane.b32.xlu1 %v3850_v38, %s4383_s8  ;;  %3846 = vrot.lane.b32.xlu0 %v3850_v38, %s4384_s23  ;;  %v948_v42 = vsel %vm943_vm1, %v915_v39, 0 }
 0x1be   : > { %3494 = vmatpush3.bf16.xpose.msra.mxu1 %v948_v42 }
 0x1bf   : > { %3499 = vmatprep.subr.bf16.mxu1 %v4381_v0 }
 0x1c1   : > { %882 = vrot.lane.b32.xlu0 %v648_v41, %s4384_s23  ;;  %885 = vrot.lane.b32.xlu1 %v648_v41, %s4383_s8 }
 0x1c5   : > { %3856 = vrot.lane.b32.xlu0 %v3850_v38, %s4385_s22  ;;  %3496 = vmatmul.mubr.msk.bf16.vlgmr.msra.gmra.mrb[4].mxu1 %vm943_vm1, %v891_v44 }
 0x1c6   : > { %888 = vrot.lane.b32.xlu1 %v648_v41, %s4385_s22  ;;  %3501 = vmatprep.mubr.msk.bf16.mxu1 %vm4382_vm0, %v4381_v0 }
 0x1d7   : > { %v874_v17 = vpop.f32.mrb[4].mxu0 }
 0x1d8   : > { %v3491_v18 = vpop.f32.mrb[5].mxu0  ;;  %v875_v23 = vadd.f32 %v3174_v22, %v874_v17 }
 0x1d9   : > { %v877_v19 = vpop.f32.mrb[6].mxu0 }
 0x1da   : > { %v3492_v20 = vpop.f32.mrb[7].mxu0  ;;  %v878_v24 = vadd.f32 %v3174_v22, %v877_v19 }
 0x1dc   : > { %v939_v25 = vpack.c.bf16 %v878_v24, %v875_v23  ;;  %v3860_v44 = vpack.i.bf16 %v878_v24, %v875_v23 }
 0x1de   : > { %3518 = vmatpush3.bf16.msra.mxu0 %v939_v25 }
 0x1df   : > { %3529 = vmatprep.subr.bf16.mxu0 %v4381_v0 }
 0x22f   : > { %v3847_v47 = vpop.permute.xlu0 %3846  ;;  %v3852_v50 = vpop.permute.xlu1 %3851 }
 0x230   : > { %v3849_v48 = vunpack.i.h.bf16 %v3847_v47  ;;  %v3848_v49 = vunpack.i.l.bf16 %v3847_v47  ;;  %v3854_v53 = vunpack.i.h.bf16 %v3852_v50  ;;  %v3853_v54 = vunpack.i.l.bf16 %v3852_v50 }
 0x232   : > { %v916_v51 = vpack.c.bf16 %v3849_v48, %v3848_v49  ;;  %v917_v56 = vpack.c.bf16 %v3854_v53, %v3853_v54 }
 0x233   : > { %v883_v52 = vpop.permute.xlu0 %882  ;;  %v886_v63 = vpop.permute.xlu1 %885 }
 0x234   : > { %v994_v55 = vsel %vm943_vm1, %v916_v51, 0  ;;  %v892_v57 = vpack.c.bf16 %v883_v52, %v883_v52  ;;  %v1040_v61 = vsel %vm943_vm1, %v917_v56, 0  ;;  %v893_v1 = vpack.c.bf16 %v886_v63, %v886_v63 }
 0x235   : > { %3500 = vmatpush3.bf16.xpose.msra.mxu1 %v994_v55 }
 0x236   : > { %3505 = vmatprep.subr.bf16.mxu1 %v4381_v0 }
 0x237   : > { %v3857_v58 = vpop.permute.xlu0 %3856 }
 0x238   : > { %v3859_v59 = vunpack.i.h.bf16 %v3857_v58  ;;  %v3858_v60 = vunpack.i.l.bf16 %v3857_v58  ;;  %v889_v3 = vpop.permute.xlu1 %888 }
 0x239   : > { %v894_v4 = vpack.c.bf16 %v889_v3, %v889_v3 }
 0x23a   : > { %v918_v62 = vpack.c.bf16 %v3859_v59, %v3858_v60 }
 0x23c   : > { %3502 = vmatmul.mubr.msk.bf16.vlgmr.msra.gmra.mrb[8].mxu1 %vm943_vm1, %v892_v57  ;;  %v1086_v2 = vsel %vm943_vm1, %v918_v62, 0 }
 0x23d   : > { %3506 = vmatpush3.bf16.xpose.msra.mxu1 %v1040_v61  ;;  %3507 = vmatprep.mubr.msk.bf16.mxu1 %vm4382_vm0, %v4381_v0 }
 0x23e   : > { %3511 = vmatprep.subr.bf16.mxu1 %v4381_v0 }
 0x244   : > { %3508 = vmatmul.mubr.msk.bf16.vlgmr.msra.gmra.mrb[12].mxu1 %vm943_vm1, %v893_v1 }
 0x245   : > { %3512 = vmatpush3.bf16.xpose.msra.mxu1 %v1086_v2  ;;  %3513 = vmatprep.mubr.msk.bf16.mxu1 %vm4382_vm0, %v4381_v0 }
 0x246   : > { %3523 = vmatprep.subr.bf16.mxu1 %v4381_v0 }
 0x24c   : > { %3514 = vmatmul.mubr.msk.bf16.vlgmr.msra.gmra.mrb[16].mxu1 %vm943_vm1, %v894_v4 }
 0x24d   : > { %3525 = vmatprep.mubr.msk.bf16.mxu1 %vm4382_vm0, %v4381_v0 }
 0x298   : > { %v984_v10 = vpop.f32.mrb[4].mxu1 }
 0x299   : > { %v1128_v11 = vmul.f32 0.17677669, %v984_v10  ;;  %v3497_v12 = vpop.f32.mrb[5].mxu1 }
 0x29a   : > { %v987_v13 = vpop.f32.mrb[6].mxu1 }
 0x29b   : > { %v3498_v14 = vpop.f32.mrb[7].mxu1  ;;  %v1134_v15 = vsel %vm536_vm2, %v1128_v11, -1e+09 }
 0x29c   : > { %v1139_v16 = vsel %vm1138_vm3, %v1134_v15, -inf }
 0x29d   : > { %1140 = vmax.xlane.f32.xlu0 %v1139_v16 }
 0x30f   : > { %v1030_v26 = vpop.f32.mrb[8].mxu1 }
 0x310   : > { %v1129_v27 = vmul.f32 0.17677669, %v1030_v26  ;;  %v3503_v28 = vpop.f32.mrb[9].mxu1 }
 0x311   : > { %v1033_v29 = vpop.f32.mrb[10].mxu1 }
 0x312   : > { %v3504_v30 = vpop.f32.mrb[11].mxu1  ;;  %v1135_v31 = vsel %vm536_vm2, %v1129_v27, -1e+09 }
 0x313   : > { %v1142_v32 = vsel %vm1138_vm3, %v1135_v31, -inf }
 0x314   : > { %1143 = vmax.xlane.f32.xlu1 %v1142_v32 }
 0x317   : > { %v1076_v33 = vpop.f32.mrb[12].mxu1 }
 0x318   : > { %v1130_v34 = vmul.f32 0.17677669, %v1076_v33  ;;  %v3509_v35 = vpop.f32.mrb[13].mxu1 }
 0x319   : > { %v1079_v36 = vpop.f32.mrb[14].mxu1 }
 0x31a   : > { %v3510_v37 = vpop.f32.mrb[15].mxu1  ;;  %v1136_v38 = vsel %vm536_vm2, %v1130_v34, -1e+09  ;;  %v3929_v36 = vld [vmem:[#allocation7 + $0xc0] sm:$0xff]  }
 0x31b   : > { %v1145_v39 = vsel %vm1138_vm3, %v1136_v38, -inf  ;;  %v3930_v37 = vld [vmem:[#allocation7 + $0xc8] sm:$0xff]  }
 0x31c   : > { %1146 = vmax.xlane.f32.xlu0 %v1145_v39 }
 0x31f   : > { %v1122_v40 = vpop.f32.mrb[16].mxu1 }
 0x320   : > { %v1131_v41 = vmul.f32 0.17677669, %v1122_v40  ;;  %v3515_v42 = vpop.f32.mrb[17].mxu1 }
 0x321   : > { %v1125_v43 = vpop.f32.mrb[18].mxu1 }
 0x322   : > { %v3516_v45 = vpop.f32.mrb[19].mxu1  ;;  %v1137_v46 = vsel %vm536_vm2, %v1131_v41, -1e+09  ;;  %v3931_v41 = vld [vmem:[#allocation7 + $0xd0] sm:$0xff]   ;;  %v3932_v43 = vld [vmem:[#allocation7 + $0xd8] sm:$0xff]  }
 0x323   : > { %v1148_v47 = vsel %vm1138_vm3, %v1137_v46, -inf  ;;  %v3934_v45 = vld [vmem:[#allocation7 + $0xe8] sm:$0xff]  }
 0x324   : > { %1149 = vmax.xlane.f32.xlu0 %v1148_v47 }
 0x325   : > { %3861 = vrot.lane.b32.xlu1 %v3860_v44, %s4384_s23 }
 0x32a   : > { %v1141_v48 = vpop.xlane.xlu0 %1140 }
 0x32b   : > { %v1151_v49 = vsub.f32 %v1134_v15, %v1141_v48 }
 0x32d   : > { %v1155_v50 = vmul.f32 1.442695, %v1151_v49 }
 0x32f   : > { %4034 = vpow2.f32 %v1155_v50  ;;  %v3936_v50 = vld [vmem:[#allocation7 + $0xf8] sm:$0xff]  }
 0x339   : > { %v4035_v51 = vpop.eup %4034 }
 0x33a   : > { %v1163_v52 = vsel %vm1138_vm3, %v4035_v51, 0.0 }
 0x349   : > { %1164 = vadd.xlane.f32.xlu1 %v1163_v52 }
 0x3a1   : > { %v1144_v53 = vpop.xlane.xlu1 %1143 }
 0x3a2   : > { %v1152_v54 = vsub.f32 %v1135_v31, %v1144_v53 }
 0x3a4   : > { %v1157_v55 = vmul.f32 1.442695, %v1152_v54 }
 0x3a5   : > { %v3862_v56 = vpop.permute.xlu1 %3861 }
 0x3a6   : > { %4036 = vpow2.f32 %v1157_v55  ;;  %v3864_v57 = vunpack.i.h.bf16 %v3862_v56  ;;  %v3863_v58 = vunpack.i.l.bf16 %v3862_v56 }
 0x3a8   : > { %v940_v59 = vpack.c.bf16 %v3864_v57, %v3863_v58  ;;  %v3940_v57 = vld [vmem:[#allocation9] sm:$0xff]  }
 0x3a9   : > { %v1147_v60 = vpop.xlane.xlu0 %1146 }
 0x3aa   : > { %v1153_v61 = vsub.f32 %v1136_v38, %v1147_v60  ;;  %3524 = vmatpush3.bf16.msra.mxu1 %v940_v59 }
 0x3ab   : > { %3535 = vmatprep.subr.bf16.mxu1 %v4381_v0 }
 0x3ac   : > { %v1159_v62 = vmul.f32 1.442695, %v1153_v61  ;;  %v3942_v61 = vld [vmem:[#allocation9 + $0x8] sm:$0xff]  }
 0x3ae   : > { %4038 = vpow2.f32 %v1159_v62  ;;  %v3944_v62 = vld [vmem:[#allocation9 + $0x10] sm:$0xff]  }
 0x3b0   : > { %v4037_v63 = vpop.eup %4036 }
 0x3b1   : > { %v1150_v1 = vpop.xlane.xlu0 %1149  ;;  %v1166_v2 = vsel %vm1138_vm3, %v4037_v63, 0.0 }
 0x3b2   : > { %v1154_v3 = vsub.f32 %v1137_v46, %v1150_v1  ;;  %1167 = vadd.xlane.f32.xlu0 %v1166_v2  ;;  %v3935_v46 = vld [vmem:[#allocation7 + $0xf0] sm:$0xff]   ;;  %v3948_v1 = vld [vmem:[#allocation9 + $0x20] sm:$0xff]   ;;  %v3950_v2 = vld [vmem:[#allocation9 + $0x28] sm:$0xff]  }
 0x3b4   : > { %v1161_v4 = vmul.f32 1.442695, %v1154_v3  ;;  %v3952_v3 = vld [vmem:[#allocation9 + $0x30] sm:$0xff]  }
 0x3b6   : > { %4040 = vpow2.f32 %v1161_v4  ;;  %v3953_v4 = vld [vmem:[#allocation9 + $0x38] sm:$0xff]  }
 0x3b8   : > { %v4039_v5 = vpop.eup %4038 }
 0x3b9   : > { %v1169_v7 = vsel %vm1138_vm3, %v4039_v5, 0.0 }
 0x3ba   : > { %1170 = vadd.xlane.f32.xlu1 %v1169_v7 }
 0x3c0   : > { %v4041_v8 = vpop.eup %4040 }
 0x3c1   : > { %v1172_v10 = vsel %vm1138_vm3, %v4041_v8, 0.0 }
 0x3c2   : > { %1173 = vadd.xlane.f32.xlu0 %v1172_v10 }
 0x3cb   : > { %3871 = vrot.lane.b32.xlu1 %v3860_v44, %s4385_s22 }
 0x3d6   : > { %v1165_v11 = vpop.xlane.xlu1 %1164 }
 0x3d7   : > { %4042 = vrcp.f32 %v1165_v11 }
 0x3d8   : > { %3866 = vrot.lane.b32.xlu0 %v3860_v44, %s4383_s8  ;;  %v3933_v44 = vld [vmem:[#allocation7 + $0xe0] sm:$0xff]  }
 0x3e1   : > { %v4043_v12 = vpop.eup %4042 }
 0x3e2   : > { %v1179_v13 = vmul.f32 %v4043_v12, %v4035_v51 }
 0x3e4   : > { %v1183_v14 = vpack.c.bf16 %v1179_v13, %v1179_v13  ;;  %v3937_v13 = vld [vmem:[#allocation9 + $0x40] sm:$0xff]  }
 0x3e6   : > { %3520 = vmatmul.mubr.msk.bf16.vlgmr.msra.gmra.mrb[8].mxu0 %vm1138_vm3, %v1183_v14 }
 0x3e7   : > { %3531 = vmatprep.mubr.msk.bf16.mxu0 %vm4382_vm0, %v4381_v0 }
 0x43f   : > { %v1168_v15 = vpop.xlane.xlu0 %1167 }
 0x440   : > { %4044 = vrcp.f32 %v1168_v15  ;;  %v3939_v15 = vld [vmem:[#allocation9 + $0x50] sm:$0xff]  }
 0x447   : > { %v1171_v16 = vpop.xlane.xlu1 %1170 }
 0x448   : > { %4046 = vrcp.f32 %v1171_v16  ;;  %v3941_v16 = vld [vmem:[#allocation9 + $0x58] sm:$0xff]  }
 0x44a   : > { %v4045_v17 = vpop.eup %4044 }
 0x44b   : > { %v1180_v18 = vmul.f32 %v4045_v17, %v4037_v63  ;;  %v3872_v19 = vpop.permute.xlu1 %3871  ;;  %v3946_v63 = vld [vmem:[#allocation9 + $0x18] sm:$0xff]   ;;  %v3943_v17 = vld [vmem:[#allocation9 + $0x60] sm:$0xff]  }
 0x44c   : > { %v3874_v20 = vunpack.i.h.bf16 %v3872_v19  ;;  %v3873_v22 = vunpack.i.l.bf16 %v3872_v19  ;;  %v3947_v19 = vld [vmem:[#allocation9 + $0x70] sm:$0xff]  }
 0x44d   : > { %v1184_v23 = vpack.c.bf16 %v1180_v18, %v1180_v18  ;;  %v3945_v18 = vld [vmem:[#allocation9 + $0x68] sm:$0xff]  }
 0x44e   : > { %v942_v24 = vpack.c.bf16 %v3874_v20, %v3873_v22  ;;  %v3949_v20 = vld [vmem:[#allocation9 + $0x78] sm:$0xff]   ;;  %v3951_v22 = vld [vmem:[%s4887_s28] sm:$0xff]   ;;  %s537_s28 = sld [smem:[#allocation3 + %s5181_s26]] }
 0x44f   : > { %v1174_v25 = vpop.xlane.xlu0 %1173  ;;  %3526 = vmatmul.mubr.msk.bf16.vlgmr.msra.gmra.mrb[20].mxu1 %vm1138_vm3, %v1184_v23 }
 0x450   : > { %4048 = vrcp.f32 %v1174_v25  ;;  %3536 = vmatpush3.bf16.msra.mxu1 %v942_v24  ;;  %3537 = vmatprep.mubr.msk.bf16.mxu1 %vm4382_vm0, %v4381_v0 }
 0x451   : > { %3561 = vmatprep.subr.bf16.mxu1 %v4381_v0 }
 0x452   : > { %v4047_v26 = vpop.eup %4046 }
 0x453   : > { %v3867_v27 = vpop.permute.xlu0 %3866  ;;  %v1181_v30 = vmul.f32 %v4047_v26, %v4039_v5 }
 0x454   : > { %v3869_v28 = vunpack.i.h.bf16 %v3867_v27  ;;  %v3868_v29 = vunpack.i.l.bf16 %v3867_v27  ;;  %v3954_v27 = vld [vmem:[#allocation9 + $0x80] sm:$0xff]  }
 0x455   : > { %v1185_v32 = vpack.c.bf16 %v1181_v30, %v1181_v30  ;;  %v3957_v30 = vld [vmem:[#allocation9 + $0x98] sm:$0xff]  }
 0x456   : > { %v941_v31 = vpack.c.bf16 %v3869_v28, %v3868_v29  ;;  %v3955_v28 = vld [vmem:[#allocation9 + $0x88] sm:$0xff]   ;;  %v3956_v29 = vld [vmem:[#allocation9 + $0x90] sm:$0xff]  }
 0x458   : > { %3530 = vmatpush3.bf16.msra.mxu0 %v941_v31  ;;  %v3958_v31 = vld [vmem:[#allocation9 + $0xa0] sm:$0xff]  }
 0x459   : > { %3541 = vmatprep.subr.bf16.mxu0 %v4381_v0 }
 0x45a   : > { %v4049_v33 = vpop.eup %4048 }
 0x45b   : > { %v1182_v34 = vmul.f32 %v4049_v33, %v4041_v8  ;;  %3532 = vmatmul.mubr.msk.bf16.vlgmr.msra.gmra.mrb[12].mxu0 %vm1138_vm3, %v1185_v32  ;;  %v3959_v32 = vld [vmem:[#allocation9 + $0xa8] sm:$0xff]   ;;  %v3960_v33 = vld [vmem:[#allocation9 + $0xb0] sm:$0xff]  }
 0x45c   : > { %3557 = vmatprep.mubr.msk.bf16.mxu0 %vm4382_vm0, %v4381_v0  ;;  %3542 = vmatpush3.bf16.msra.mxu0 %v3929_v36 }
 0x45d   : > { %v1186_v35 = vpack.c.bf16 %v1182_v34, %v1182_v34  ;;  %3543 = vmatprep.subr.bf16.mxu0 %v4381_v0  ;;  %v3961_v34 = vld [vmem:[#allocation9 + $0xb8] sm:$0xff]  }
 0x45f   : > { %3538 = vmatmul.mubr.msk.bf16.vlgmr.msra.gmra.mrb[24].mxu1 %vm1138_vm3, %v1186_v35 }
 0x460   : > { %3577 = vmatprep.mubr.msk.bf16.mxu1 %vm4382_vm0, %v4381_v0  ;;  %3544 = vmatpush3.bf16.msra.mxu0 %v3930_v37 }
 0x461   : > { %3545 = vmatprep.subr.bf16.mxu0 %v4381_v0  ;;  %3562 = vmatpush3.bf16.msra.mxu1 %v3940_v57 }
 0x462   : > { %3563 = vmatprep.subr.bf16.mxu1 %v4381_v0 }
 0x464   : > { %3546 = vmatpush3.bf16.msra.mxu0 %v3931_v41 }
 0x465   : > { %3547 = vmatprep.subr.bf16.mxu0 %v4381_v0  ;;  %3564 = vmatpush3.bf16.msra.mxu1 %v3942_v61 }
 0x466   : > { %3565 = vmatprep.subr.bf16.mxu1 %v4381_v0 }
 0x468   : > { %3548 = vmatpush3.bf16.msra.mxu0 %v3932_v43 }
 0x469   : > { %3549 = vmatprep.subr.bf16.mxu0 %v4381_v0  ;;  %3566 = vmatpush3.bf16.msra.mxu1 %v3944_v62 }
 0x46a   : > { %3567 = vmatprep.subr.bf16.mxu1 %v4381_v0 }
 0x46c   : > { %3550 = vmatpush3.bf16.msra.mxu0 %v3933_v44 }
 0x46d   : > { %3551 = vmatprep.subr.bf16.mxu0 %v4381_v0  ;;  %3568 = vmatpush3.bf16.msra.mxu1 %v3946_v63 }
 0x46e   : > { %3569 = vmatprep.subr.bf16.mxu1 %v4381_v0 }
 0x470   : > { %3552 = vmatpush3.bf16.msra.mxu0 %v3934_v45 }
 0x471   : > { %3553 = vmatprep.subr.bf16.mxu0 %v4381_v0  ;;  %3570 = vmatpush3.bf16.msra.mxu1 %v3948_v1 }
 0x472   : > { %3571 = vmatprep.subr.bf16.mxu1 %v4381_v0 }
 0x474   : > { %3554 = vmatpush3.bf16.msra.mxu0 %v3935_v46  ;;  %v3201_v46 = vld [vmem:[%s5184_s19] ss:$0 sm:$0xff] }
 0x475   : > { %3555 = vmatprep.subr.bf16.mxu0 %v4381_v0  ;;  %3572 = vmatpush3.bf16.msra.mxu1 %v3950_v2 }
 0x476   : > { %3573 = vmatprep.subr.bf16.mxu1 %v4381_v0 }
 0x478   : > { %3556 = vmatpush3.bf16.msra.mxu0 %v3936_v50 }
 0x479   : > { %3581 = vmatprep.subr.bf16.mxu0 %v4381_v0  ;;  %3574 = vmatpush3.bf16.msra.mxu1 %v3952_v3 }
 0x47a   : > { %3575 = vmatprep.subr.bf16.mxu1 %v4381_v0 }
 0x47d   : > { %3576 = vmatpush3.bf16.msra.mxu1 %v3953_v4 }
 0x47e   : > { %3601 = vmatprep.subr.bf16.mxu1 %v4381_v0 }
 0x480   : > { %3578 = vmatmul.mubr.bf16.vlgmr.msra.gmra.mrb[28].mxu1 %v4762_v21  ;;  %v3938_v21 = vld [vmem:[#allocation9 + $0x48] sm:$0xff]  }
 0x481   : > { %3617 = vmatprep.mubr.msk.bf16.mxu1 %vm4382_vm0, %v4381_v0  ;;  %3602 = vmatpush3.bf16.msra.mxu1 %v3954_v27 }
 0x482   : > { %3603 = vmatprep.subr.bf16.mxu1 %v4381_v0 }
 0x485   : > { %3604 = vmatpush3.bf16.msra.mxu1 %v3955_v28 }
 0x486   : > { %3605 = vmatprep.subr.bf16.mxu1 %v4381_v0 }
 0x489   : > { %3606 = vmatpush3.bf16.msra.mxu1 %v3956_v29 }
 0x48a   : > { %3607 = vmatprep.subr.bf16.mxu1 %v4381_v0 }
 0x48d   : > { %3608 = vmatpush3.bf16.msra.mxu1 %v3957_v30 }
 0x48e   : > { %3609 = vmatprep.subr.bf16.mxu1 %v4381_v0 }
 0x491   : > { %3610 = vmatpush3.bf16.msra.mxu1 %v3958_v31 }
 0x492   : > { %3611 = vmatprep.subr.bf16.mxu1 %v4381_v0 }
 0x495   : > { %3612 = vmatpush3.bf16.msra.mxu1 %v3959_v32 }
 0x496   : > { %3613 = vmatprep.subr.bf16.mxu1 %v4381_v0 }
 0x499   : > { %3614 = vmatpush3.bf16.msra.mxu1 %v3960_v33 }
 0x49a   : > { %3615 = vmatprep.subr.bf16.mxu1 %v4381_v0 }
 0x49d   : > { %3616 = vmatpush3.bf16.msra.mxu1 %v3961_v34 }
 0x49e   : > { %3627 = vmatprep.subr.bf16.mxu1 %v4381_v0 }
 0x4a0   : > { %3618 = vmatmul.mubr.bf16.vlgmr.msra.gmra.mrb[32].mxu1 %v3951_v22 }
 0x4a1   : > { %3629 = vmatprep.mubr.msk.bf16.mxu1 %vm4382_vm0, %v4381_v0 }
 0x4b9   : > { %v4862_v38 = vpop.f32.mrb[8].mxu0 }
 0x4ba   : > { %v3521_v39 = vpop.f32.mrb[9].mxu0 }
 0x4bb   : > { %v1227_v40 = vpop.f32.mrb[10].mxu0  ;;  %v3211_v39 = vld [vmem:[%s5183_s13 + $0x1] ss:$0 sm:$0xff] }
 0x4bc   : > { %v3522_v42 = vpop.f32.mrb[11].mxu0 }
 0x522   : > { %v1267_v47 = vpop.f32.mrb[20].mxu1 }
 0x523   : > { %1360 = vrot.lane.b32.xlu1 %v1267_v47, %s4385_s22  ;;  %v3527_v48 = vpop.f32.mrb[21].mxu1 }
 0x524   : > { %v1270_v49 = vpop.f32.mrb[22].mxu1 }
 0x525   : > { %v3528_v51 = vpop.f32.mrb[23].mxu1 }
 0x52e   : > { %v1310_v52 = vpop.f32.mrb[12].mxu0 }
 0x52f   : > { %1364 = vrot.lane.b32.xlu0 %v1310_v52, %s4383_s8  ;;  %v3533_v53 = vpop.f32.mrb[13].mxu0 }
 0x530   : > { %v1313_v54 = vpop.f32.mrb[14].mxu0 }
 0x531   : > { %v3534_v55 = vpop.f32.mrb[15].mxu0 }
 0x532   : > { %v1353_v56 = vpop.f32.mrb[24].mxu1 }
 0x533   : > { %1368 = vrot.lane.b32.xlu1 %v1353_v56, %s4384_s23  ;;  %v3539_v58 = vpop.f32.mrb[25].mxu1 }
 0x534   : > { %v1356_v59 = vpop.f32.mrb[26].mxu1 }
 0x535   : > { %v3540_v60 = vpop.f32.mrb[27].mxu1 }
 0x553   : > { %v1609_v23 = vpop.f32.mrb[28].mxu1 }
 0x554   : > { %v3579_v24 = vpop.f32.mrb[29].mxu1  ;;  %v1610_v50 = vadd.f32 %v3201_v46, %v1609_v23 }
 0x555   : > { %v1612_v25 = vpop.f32.mrb[30].mxu1 }
 0x556   : > { %v3580_v26 = vpop.f32.mrb[31].mxu1  ;;  %v1859_v51 = vpack.c.bf16 %v1610_v50, %v1610_v50 }
 0x595   : > { %v1361_v5 = vpop.permute.xlu1 %1360 }
 0x596   : > { %v1371_v8 = vsel %vm943_vm1, %v4862_v38, %v1361_v5 }
 0x5a1   : > { %v1365_v7 = vpop.permute.xlu0 %1364 }
 0x5a2   : > { %v1373_v10 = vsel %vm1372_vm4, %v1371_v8, %v1365_v7  ;;  %v3222_v7 = vld [vmem:[%s5184_s19 + $0x2] ss:$0 sm:$0xff] }
 0x5a5   : > { %v1369_v11 = vpop.permute.xlu1 %1368 }
 0x5a6   : > { %v1375_v12 = vsel %vm1374_vm5, %v1373_v10, %v1369_v11  ;;  %v1842_v10 = vpop.f32.mrb[32].mxu1 }
 0x5a7   : > { %v1376_v14 = vpack.c.bf16 %v1375_v12, %v1375_v12  ;;  %v1843_v11 = vadd.f32 %v3222_v7, %v1842_v10  ;;  %v3619_v12 = vpop.f32.mrb[33].mxu1 }
 0x5a9   : > { %3558 = vmatmul.mubr.bf16.vlgmr.msra.gmra.mrb[16].mxu0 %v1376_v14  ;;  %v1845_v14 = vpop.f32.mrb[34].mxu1 }
 0x5aa   : > { %3582 = vmatpush3.bf16.msra.mxu0 %v3937_v13  ;;  %3597 = vmatprep.mubr.msk.bf16.mxu0 %vm4382_vm0, %v4381_v0 }
 0x5ab   : > { %3583 = vmatprep.subr.bf16.mxu0 %v4381_v0 }
 0x5ae   : > { %3584 = vmatpush3.bf16.msra.mxu0 %v3938_v21  ;;  %v1846_v21 = vadd.f32 %v3222_v7, %v1845_v14 }
 0x5af   : > { %3585 = vmatprep.subr.bf16.mxu0 %v4381_v0 }
 0x5b2   : > { %3586 = vmatpush3.bf16.msra.mxu0 %v3939_v15  ;;  %v3620_v15 = vpop.f32.mrb[35].mxu1 }
 0x5b3   : > { %3587 = vmatprep.subr.bf16.mxu0 %v4381_v0 }
 0x5b6   : > { %3588 = vmatpush3.bf16.msra.mxu0 %v3941_v16 }
 0x5b7   : > { %3589 = vmatprep.subr.bf16.mxu0 %v4381_v0 }
 0x5ba   : > { %3590 = vmatpush3.bf16.msra.mxu0 %v3943_v17  ;;  %v1907_v17 = vpack.c.bf16 %v1846_v21, %v1843_v11 }
 0x5bb   : > { %3591 = vmatprep.subr.bf16.mxu0 %v4381_v0 }
 0x5be   : > { %3592 = vmatpush3.bf16.msra.mxu0 %v3945_v18 }
 0x5bf   : > { %3593 = vmatprep.subr.bf16.mxu0 %v4381_v0 }
 0x5c2   : > { %3594 = vmatpush3.bf16.msra.mxu0 %v3947_v19  ;;  %v538_v19 = vstv %s537_s28  ;;  %s5189_s28 = sld [smem:[#allocation20_spill]] }
 0x5c3   : > { %3595 = vmatprep.subr.bf16.mxu0 %v4381_v0  ;;  %vm4962_vm6 = vcmp.lt.s32.totalorder %v4820_v9, %v538_v19 }
 0x5c6   : > { %3596 = vmatpush3.bf16.msra.mxu0 %v3949_v20 }
 0x5c7   : > { %3621 = vmatprep.subr.bf16.mxu0 %v4381_v0 }
 0x5c9   : > { %3598 = vmatmul.mubr.bf16.vlgmr.msra.gmra.mrb[20].mxu0 %v3951_v22 }
 0x5ca   : > { %3623 = vmatprep.mubr.msk.bf16.mxu0 %vm4382_vm0, %v4381_v0 }
 0x67c   : > { %v4922_v35 = vpop.f32.mrb[16].mxu0 }
 0x67d   : > { %v3559_v36 = vpop.f32.mrb[17].mxu0 }
 0x67e   : > { %v1487_v37 = vpop.f32.mrb[18].mxu0 }
 0x67f   : > { %v3560_v38 = vpop.f32.mrb[19].mxu0 }
 0x69c   : > { %v1728_v40 = vpop.f32.mrb[20].mxu0 }
 0x69d   : > { %v3599_v41 = vpop.f32.mrb[21].mxu0  ;;  %v1729_v43 = vadd.f32 %v3211_v39, %v1728_v40 }
 0x69e   : > { %v1731_v42 = vpop.f32.mrb[22].mxu0 }
 0x69f   : > { %v1732_v44 = vadd.f32 %v3211_v39, %v1731_v42  ;;  %v3600_v45 = vpop.f32.mrb[23].mxu0 }
 0x6a1   : > { %v3880_v47 = vpack.i.bf16 %v1732_v44, %v1729_v43  ;;  %v1883_v48 = vpack.c.bf16 %v1732_v44, %v1729_v43 }
 0x6a3   : > { %3881 = vrot.lane.b32.xlu1 %v3880_v47, %s4383_s8  ;;  %3876 = vrot.lane.b32.xlu0 %v3880_v47, %s4384_s23  ;;  %v1915_v49 = vsel %vm943_vm1, %v1883_v48, 0 }
 0x6a4   : > { %3622 = vmatpush3.bf16.xpose.msra.mxu0 %v1915_v49 }
 0x6a5   : > { %3633 = vmatprep.subr.bf16.mxu0 %v4381_v0 }
 0x6a7   : > { %3886 = vrot.lane.b32.xlu1 %v3880_v47, %s4385_s22  ;;  %1850 = vrot.lane.b32.xlu0 %v1610_v50, %s4384_s23 }
 0x6ab   : > { %3624 = vmatmul.mubr.msk.bf16.vlgmr.msra.gmra.mrb[24].mxu0 %vm943_vm1, %v1859_v51  ;;  %1856 = vrot.lane.b32.xlu1 %v1610_v50, %s4385_s22 }
 0x6ac   : > { %1853 = vrot.lane.b32.xlu0 %v1610_v50, %s4383_s8  ;;  %3635 = vmatprep.mubr.msk.bf16.mxu0 %vm4382_vm0, %v4381_v0  ;;  %v3890_v50 = vpack.i.bf16 %v1846_v21, %v1843_v11 }
 0x715   : > { %v3882_v52 = vpop.permute.xlu1 %3881  ;;  %v3877_v53 = vpop.permute.xlu0 %3876 }
 0x716   : > { %v3884_v54 = vunpack.i.h.bf16 %v3882_v52  ;;  %v3883_v55 = vunpack.i.l.bf16 %v3882_v52  ;;  %v3879_v56 = vunpack.i.h.bf16 %v3877_v53  ;;  %v3878_v57 = vunpack.i.l.bf16 %v3877_v53 }
 0x718   : > { %v1885_v58 = vpack.c.bf16 %v3884_v54, %v3883_v55  ;;  %v1884_v59 = vpack.c.bf16 %v3879_v56, %v3878_v57 }
 0x719   : > { %v3887_v60 = vpop.permute.xlu1 %3886  ;;  %v1851_v61 = vpop.permute.xlu0 %1850 }
 0x71a   : > { %v3889_v62 = vunpack.i.h.bf16 %v3887_v60  ;;  %v3888_v63 = vunpack.i.l.bf16 %v3887_v60  ;;  %v1961_v1 = vsel %vm943_vm1, %v1884_v59, 0  ;;  %v2007_v2 = vsel %vm943_vm1, %v1885_v58, 0 }
 0x71b   : > { %3628 = vmatpush3.bf16.xpose.msra.mxu1 %v1961_v1  ;;  %3634 = vmatpush3.bf16.xpose.msra.mxu0 %v2007_v2  ;;  %v1860_v4 = vpack.c.bf16 %v1851_v61, %v1851_v61 }
 0x71c   : > { %3639 = vmatprep.subr.bf16.mxu1 %v4381_v0  ;;  %3645 = vmatprep.subr.bf16.mxu0 %v4381_v0  ;;  %v1886_v3 = vpack.c.bf16 %v3889_v62, %v3888_v63 }
 0x71d   : > { %v1857_v16 = vpop.permute.xlu1 %1856 }
 0x71e   : > { %v1854_v5 = vpop.permute.xlu0 %1853  ;;  %v2053_v13 = vsel %vm943_vm1, %v1886_v3, 0  ;;  %v1862_v18 = vpack.c.bf16 %v1857_v16, %v1857_v16 }
 0x71f   : > { %v1861_v8 = vpack.c.bf16 %v1854_v5, %v1854_v5 }
 0x722   : > { %3630 = vmatmul.mubr.msk.bf16.vlgmr.msra.gmra.mrb[36].mxu1 %vm943_vm1, %v1860_v4  ;;  %3636 = vmatmul.mubr.msk.bf16.vlgmr.msra.gmra.mrb[28].mxu0 %vm943_vm1, %v1861_v8 }
 0x723   : > { %3640 = vmatpush3.bf16.xpose.msra.mxu1 %v2053_v13  ;;  %3641 = vmatprep.mubr.msk.bf16.mxu1 %vm4382_vm0, %v4381_v0 }
 0x724   : > { %3651 = vmatprep.subr.bf16.mxu1 %v4381_v0  ;;  %3647 = vmatprep.mubr.msk.bf16.mxu0 %vm4382_vm0, %v4381_v0 }
 0x725   : > { %3646 = vmatpush3.bf16.msra.mxu0 %v1907_v17 }
 0x726   : > { %3657 = vmatprep.subr.bf16.mxu0 %v4381_v0 }
 0x72a   : > { %3642 = vmatmul.mubr.msk.bf16.vlgmr.msra.gmra.mrb[40].mxu1 %vm943_vm1, %v1862_v18 }
 0x72b   : > { %3653 = vmatprep.mubr.msk.bf16.mxu1 %vm4382_vm0, %v4381_v0 }
 0x77e   : > { %v1951_v20 = vpop.f32.mrb[24].mxu0 }
 0x77f   : > { %v2095_v23 = vmul.f32 0.17677669, %v1951_v20  ;;  %v3625_v24 = vpop.f32.mrb[25].mxu0 }
 0x780   : > { %v1954_v25 = vpop.f32.mrb[26].mxu0 }
 0x781   : > { %v3626_v26 = vpop.f32.mrb[27].mxu0  ;;  %v2101_v27 = vsel %vm4962_vm6, %v2095_v23, -1e+09 }
 0x782   : > { %v2105_v28 = vsel %vm1138_vm3, %v2101_v27, -inf }
 0x783   : > { %2106 = vmax.xlane.f32.xlu0 %v2105_v28 }
 0x7f5   : > { %v1997_v29 = vpop.f32.mrb[36].mxu1  ;;  %v2043_v31 = vpop.f32.mrb[28].mxu0 }
 0x7f6   : > { %v2096_v30 = vmul.f32 0.17677669, %v1997_v29  ;;  %v3631_v32 = vpop.f32.mrb[37].mxu1  ;;  %v2097_v33 = vmul.f32 0.17677669, %v2043_v31  ;;  %v3637_v34 = vpop.f32.mrb[29].mxu0 }
 0x7f7   : > { %v2000_v9 = vpop.f32.mrb[38].mxu1  ;;  %v2046_v36 = vpop.f32.mrb[30].mxu0 }
 0x7f8   : > { %v3632_v37 = vpop.f32.mrb[39].mxu1  ;;  %v2102_v38 = vsel %vm4962_vm6, %v2096_v30, -1e+09  ;;  %v3638_v39 = vpop.f32.mrb[31].mxu0  ;;  %v2103_v41 = vsel %vm4962_vm6, %v2097_v33, -1e+09 }
 0x7f9   : > { %v2108_v40 = vsel %vm1138_vm3, %v2102_v38, -inf  ;;  %v2111_v42 = vsel %vm1138_vm3, %v2103_v41, -inf }
 0x7fa   : > { %2109 = vmax.xlane.f32.xlu1 %v2108_v40  ;;  %2112 = vmax.xlane.f32.xlu0 %v2111_v42  ;;  %v3962_v42 = vld [vmem:[#allocation9 + $0xc0] sm:$0xff]  }
 0x7fd   : > { %v2089_v43 = vpop.f32.mrb[40].mxu1 }
 0x7fe   : > { %v2098_v44 = vmul.f32 0.17677669, %v2089_v43  ;;  %v3643_v45 = vpop.f32.mrb[41].mxu1  ;;  %v3963_v43 = vld [vmem:[#allocation9 + $0xc8] sm:$0xff]  }
 0x7ff   : > { %v2092_v46 = vpop.f32.mrb[42].mxu1  ;;  %v3965_v45 = vld [vmem:[#allocation9 + $0xd8] sm:$0xff]  }
 0x800   : > { %v3644_v47 = vpop.f32.mrb[43].mxu1  ;;  %v2104_v48 = vsel %vm4962_vm6, %v2098_v44, -1e+09  ;;  %v3964_v44 = vld [vmem:[#allocation9 + $0xd0] sm:$0xff]   ;;  %v3966_v46 = vld [vmem:[#allocation9 + $0xe0] sm:$0xff]  }
 0x801   : > { %v2114_v49 = vsel %vm1138_vm3, %v2104_v48, -inf  ;;  %v3967_v47 = vld [vmem:[#allocation9 + $0xe8] sm:$0xff]  }
 0x802   : > { %2115 = vmax.xlane.f32.xlu0 %v2114_v49  ;;  %v3969_v49 = vld [vmem:[#allocation9 + $0xf8] sm:$0xff]  }
 0x80b   : > { %3891 = vrot.lane.b32.xlu1 %v3890_v50, %s4384_s23 }
 0x810   : > { %v2107_v51 = vpop.xlane.xlu0 %2106 }
 0x811   : > { %v2117_v52 = vsub.f32 %v2101_v27, %v2107_v51 }
 0x813   : > { %v2121_v53 = vmul.f32 1.442695, %v2117_v52 }
 0x815   : > { %4050 = vpow2.f32 %v2121_v53 }
 0x81f   : > { %v4051_v54 = vpop.eup %4050 }
 0x820   : > { %v2129_v55 = vsel %vm1138_vm3, %v4051_v54, 0.0 }
 0x82f   : > { %2130 = vadd.xlane.f32.xlu1 %v2129_v55 }
 0x887   : > { %v2110_v56 = vpop.xlane.xlu1 %2109  ;;  %v2113_v58 = vpop.xlane.xlu0 %2112 }
 0x888   : > { %v2118_v57 = vsub.f32 %v2102_v38, %v2110_v56  ;;  %v2119_v59 = vsub.f32 %v2103_v41, %v2113_v58 }
 0x88a   : > { %v2123_v60 = vmul.f32 1.442695, %v2118_v57  ;;  %v2125_v61 = vmul.f32 1.442695, %v2119_v59 }
 0x88b   : > { %v3892_v62 = vpop.permute.xlu1 %3891 }
 0x88c   : > { %4052 = vpow2.f32 %v2123_v60  ;;  %v3894_v63 = vunpack.i.h.bf16 %v3892_v62  ;;  %v3893_v1 = vunpack.i.l.bf16 %v3892_v62 }
 0x88d   : > { %4054 = vpow2.f32 %v2125_v61  ;;  %v3192_v61 = vld [vmem:[%s5180_s4 + $0x3] ss:$0 sm:$0xff] }
 0x88e   : > { %v1908_v2 = vpack.c.bf16 %v3894_v63, %v3893_v1  ;;  %v1485_v62 = vadd.f32 %v3192_v61, %v4922_v35  ;;  %v4080_v63 = vld [vmem:[%s4752_s24] sm:$0xff]  ;;  %s3152_s24 = sshll.u32 %s4880_s10, 2 }
 0x88f   : > { %v2116_v3 = vpop.xlane.xlu0 %2115  ;;  %v3978_v35 = vld [vmem:[#allocation10 + $0x24] ss:$16 sps:$4 sm:$0xff]  }
 0x890   : > { %v2120_v4 = vsub.f32 %v2104_v48, %v2116_v3  ;;  %3652 = vmatpush3.bf16.msra.mxu1 %v1908_v2  ;;  %v3968_v48 = vld [vmem:[#allocation9 + $0xf0] sm:$0xff]   ;;  %v1490_v1 = vadd.f32 %v4080_v63, %v1485_v62  ;;  %v2464_v63 = vsub.s32 1, %v4815_v6 }
 0x891   : > { %3663 = vmatprep.subr.bf16.mxu1 %v4381_v0 }
 0x892   : > { %v2127_v5 = vmul.f32 1.442695, %v2120_v4  ;;  %v1491_v2 = vmul.f32 %v1490_v1, %v1490_v1 }
 0x894   : > { %4056 = vpow2.f32 %v2127_v5 }
 0x896   : > { %v4053_v7 = vpop.eup %4052 }
 0x897   : > { %v4055_v8 = vpop.eup %4054  ;;  %v2132_v10 = vsel %vm1138_vm3, %v4053_v7, 0.0 }
 0x898   : > { %2133 = vadd.xlane.f32.xlu0 %v2132_v10  ;;  %v2135_v11 = vsel %vm1138_vm3, %v4055_v8, 0.0 }
 0x899   : > { %2136 = vadd.xlane.f32.xlu1 %v2135_v11 }
 0x89e   : > { %v4057_v12 = vpop.eup %4056 }
 0x89f   : > { %v2138_v13 = vsel %vm1138_vm3, %v4057_v12, 0.0 }
 0x8a0   : > { %2139 = vadd.xlane.f32.xlu0 %v2138_v13  ;;  %v3972_v13 = vld [vmem:[#allocation10 + $0x4] ss:$16 sps:$4 sm:$0xff]  }
 0x8aa   : > { %3901 = vrot.lane.b32.xlu1 %v3890_v50, %s4385_s22 }
 0x8b6   : > { %3896 = vrot.lane.b32.xlu0 %v3890_v50, %s4383_s8 }
 0x8bc   : > { %v2131_v14 = vpop.xlane.xlu1 %2130 }
 0x8bd   : > { %4058 = vrcp.f32 %v2131_v14  ;;  %v3973_v14 = vld [vmem:[#allocation10 + $0x8] ss:$16 sps:$4 sm:$0xff]  }
 0x8c7   : > { %v4059_v21 = vpop.eup %4058 }
 0x8c8   : > { %v2145_v15 = vmul.f32 %v4059_v21, %v4051_v54  ;;  %v3975_v21 = vld [vmem:[#allocation10 + $0xc] ss:$16 sps:$4 sm:$0xff]  }
 0x8ca   : > { %v2149_v16 = vpack.c.bf16 %v2145_v15, %v2145_v15  ;;  %v3981_v15 = vld [vmem:[#allocation10 + $0x2c] ss:$16 sps:$4 sm:$0xff]  }
 0x8cc   : > { %3648 = vmatmul.mubr.msk.bf16.vlgmr.msra.gmra.mrb[32].mxu0 %vm1138_vm3, %v2149_v16  ;;  %v3976_v16 = vld [vmem:[#allocation10 + $0x20] ss:$16 sps:$4 sm:$0xff]  }
 0x8cd   : > { %3659 = vmatprep.mubr.msk.bf16.mxu0 %vm4382_vm0, %v4381_v0 }
 0x925   : > { %v2134_v17 = vpop.xlane.xlu0 %2133 }
 0x926   : > { %v2137_v18 = vpop.xlane.xlu1 %2136  ;;  %4060 = vrcp.f32 %v2134_v17  ;;  %v3979_v17 = vld [vmem:[#allocation10 + $0x28] ss:$16 sps:$4 sm:$0xff]  }
 0x927   : > { %4062 = vrcp.f32 %v2137_v18  ;;  %v3984_v18 = vld [vmem:[#allocation10 + $0x44] ss:$16 sps:$4 sm:$0xff]  }
 0x92a   : > { %v3902_v19 = vpop.permute.xlu1 %3901 }
 0x92b   : > { %v3904_v23 = vunpack.i.h.bf16 %v3902_v19  ;;  %v3903_v24 = vunpack.i.l.bf16 %v3902_v19  ;;  %v3987_v19 = vld [vmem:[#allocation10 + $0x4c] ss:$16 sps:$4 sm:$0xff]  }
 0x92d   : > { %v2140_v20 = vpop.xlane.xlu0 %2139  ;;  %v1910_v32 = vpack.c.bf16 %v3904_v23, %v3903_v24 }
 0x92e   : > { %4064 = vrcp.f32 %v2140_v20  ;;  %v3982_v20 = vld [vmem:[#allocation10 + $0x40] ss:$16 sps:$4 sm:$0xff]  }
 0x930   : > { %v4061_v22 = vpop.eup %4060 }
 0x931   : > { %v4063_v25 = vpop.eup %4062  ;;  %v2146_v26 = vmul.f32 %v4061_v22, %v4053_v7  ;;  %v3897_v27 = vpop.permute.xlu0 %3896  ;;  %v3985_v22 = vld [vmem:[#allocation10 + $0x48] ss:$16 sps:$4 sm:$0xff]  }
 0x932   : > { %v3899_v28 = vunpack.i.h.bf16 %v3897_v27  ;;  %v3898_v29 = vunpack.i.l.bf16 %v3897_v27  ;;  %v2147_v30 = vmul.f32 %v4063_v25, %v4055_v8 }
 0x933   : > { %v2150_v31 = vpack.c.bf16 %v2146_v26, %v2146_v26  ;;  %v1501_v26 = vsub.s32 0, %v4815_v6 }
 0x934   : > { %v1909_v33 = vpack.c.bf16 %v3899_v28, %v3898_v29  ;;  %v2151_v34 = vpack.c.bf16 %v2147_v30, %v2147_v30 }
 0x935   : > { %3654 = vmatmul.mubr.msk.bf16.vlgmr.msra.gmra.mrb[44].mxu1 %vm1138_vm3, %v2150_v31  ;;  %v3240_v31 = vld [vmem:[%s5184_s19 + $0x3] ss:$0 sm:$0xff] }
 0x936   : > { %3664 = vmatpush3.bf16.msra.mxu1 %v1910_v32  ;;  %3658 = vmatpush3.bf16.msra.mxu0 %v1909_v33 }
 0x937   : > { %3665 = vmatprep.mubr.msk.bf16.mxu1 %vm4382_vm0, %v4381_v0  ;;  %3669 = vmatprep.subr.bf16.mxu0 %v4381_v0 }
 0x938   : > { %v4065_v9 = vpop.eup %4064  ;;  %2682 = vmatprep.subr.bf16.mxu1 %v3972_v13  ;;  %v4023_v13 = vld [vmem:[#allocation12 + $0x10] sm:$0xff]  }
 0x939   : > { %v2148_v36 = vmul.f32 %v4065_v9, %v4057_v12  ;;  %3660 = vmatmul.mubr.msk.bf16.vlgmr.msra.gmra.mrb[36].mxu0 %vm1138_vm3, %v2151_v34  ;;  %v3970_v12 = vld [vmem:[#allocation10] ss:$16 sps:$4 sm:$0xff]  }
 0x93a   : > { %3685 = vmatprep.mubr.msk.bf16.mxu0 %vm4382_vm0, %v4381_v0  ;;  %3670 = vmatpush3.bf16.msra.mxu0 %v3962_v42  ;;  %v3988_v42 = vld [vmem:[#allocation10 + $0x60] ss:$16 sps:$4 sm:$0xff]  }
 0x93b   : > { %v2152_v37 = vpack.c.bf16 %v2148_v36, %v2148_v36  ;;  %3671 = vmatprep.subr.bf16.mxu0 %v4381_v0 }
 0x93d   : > { %3666 = vmatmul.mubr.msk.bf16.vlgmr.msra.gmra.mrb[48].mxu1 %vm1138_vm3, %v2152_v37 }
 0x93e   : > { %3672 = vmatpush3.bf16.msra.mxu0 %v3963_v43  ;;  %2683 = vmatpush1.bf16.msra.mxu1 %v3970_v12  ;;  %v3991_v43 = vld [vmem:[#allocation10 + $0x68] ss:$16 sps:$4 sm:$0xff]   ;;  %v4022_v12 = vld [vmem:[#allocation12 + $0x50] sm:$0xff]  }
 0x93f   : > { %3673 = vmatprep.subr.bf16.mxu0 %v4381_v0  ;;  %2684 = vmatprep.subr.bf16.mxu1 %v3978_v35  ;;  %v4026_v35 = vld [vmem:[#allocation12 + $0x60] sm:$0xff]  }
 0x942   : > { %3674 = vmatpush3.bf16.msra.mxu0 %v3964_v44  ;;  %2685 = vmatpush1.bf16.msra.mxu1 %v3976_v16  ;;  %v3994_v44 = vld [vmem:[#allocation10 + $0x80] ss:$16 sps:$4 sm:$0xff]   ;;  %v4028_v16 = vld [vmem:[#allocation12 + $0x68] sm:$0xff]  }
 0x943   : > { %3675 = vmatprep.subr.bf16.mxu0 %v4381_v0  ;;  %2686 = vmatprep.subr.bf16.mxu1 %v3984_v18  ;;  %v4030_v18 = vld [vmem:[#allocation12 + $0x70] sm:$0xff]  }
 0x946   : > { %3676 = vmatpush3.bf16.msra.mxu0 %v3965_v45  ;;  %2687 = vmatpush1.bf16.msra.mxu1 %v3982_v20  ;;  %v3996_v45 = vld [vmem:[#allocation10 + $0x84] ss:$16 sps:$4 sm:$0xff]   ;;  %v4032_v20 = vld [vmem:[#allocation12 + $0x78] sm:$0xff]  }
 0x947   : > { %3677 = vmatprep.subr.bf16.mxu0 %v4381_v0 }
 0x94a   : > { %3678 = vmatpush3.bf16.msra.mxu0 %v3966_v46  ;;  %v3997_v46 = vld [vmem:[#allocation10 + $0x88] ss:$16 sps:$4 sm:$0xff]  }
 0x94b   : > { %3679 = vmatprep.subr.bf16.mxu0 %v4381_v0 }
 0x94e   : > { %3680 = vmatpush3.bf16.msra.mxu0 %v3967_v47  ;;  %v3999_v47 = vld [vmem:[#allocation10 + $0x8c] ss:$16 sps:$4 sm:$0xff]  }
 0x94f   : > { %3681 = vmatprep.subr.bf16.mxu0 %v4381_v0 }
 0x952   : > { %3682 = vmatpush3.bf16.msra.mxu0 %v3968_v48  ;;  %v4002_v48 = vld [vmem:[#allocation10 + $0xa4] ss:$16 sps:$4 sm:$0xff]  }
 0x953   : > { %3683 = vmatprep.subr.bf16.mxu0 %v4381_v0 }
 0x956   : > { %3684 = vmatpush3.bf16.msra.mxu0 %v3969_v49  ;;  %v4005_v49 = vld [vmem:[#allocation10 + $0xac] ss:$16 sps:$4 sm:$0xff]  }
 0x957   : > { %2723 = vmatprep.subr.bf16.mxu0 %v3975_v21  ;;  %v4025_v21 = vld [vmem:[#allocation12 + $0x18] sm:$0xff]  }
 0x99f   : > { %v2190_v38 = vpop.f32.mrb[32].mxu0 }
 0x9a0   : > { %v3649_v39 = vpop.f32.mrb[33].mxu0 }
 0x9a1   : > { %v2193_v40 = vpop.f32.mrb[34].mxu0 }
 0x9a2   : > { %v3650_v41 = vpop.f32.mrb[35].mxu0  ;;  %v3990_v40 = vld [vmem:[#allocation10 + $0x64] ss:$16 sps:$4 sm:$0xff]  }
 0x9a3   : > { %v3993_v41 = vld [vmem:[#allocation10 + $0x6c] ss:$16 sps:$4 sm:$0xff]   ;;  %2688 = vmatprep.subr.bf16.mxu1 %v3990_v40 }
 0x9a4   : > { %2689 = vmatpush1.bf16.msra.mxu1 %v3988_v42 }
 0x9a5   : > { %2690 = vmatprep.subr.bf16.mxu1 %v3996_v45 }
 0x9a8   : > { %2691 = vmatpush1.bf16.msra.mxu1 %v3994_v44 }
 0x9a9   : > { %2692 = vmatprep.subr.bf16.mxu1 %v4002_v48 }
 0xa08   : > { %v2233_v50 = vpop.f32.mrb[44].mxu1 }
 0xa09   : > { %2326 = vrot.lane.b32.xlu1 %v2233_v50, %s4385_s22  ;;  %v3655_v51 = vpop.f32.mrb[45].mxu1  ;;  %s5187_s22 = sld [smem:[#allocation31_spill]]  ;;  %v4000_v50 = vld [vmem:[#allocation10 + $0xa0] ss:$16 sps:$4 sm:$0xff]  }
 0xa0a   : > { %v2236_v52 = vpop.f32.mrb[46].mxu1  ;;  %v4003_v51 = vld [vmem:[#allocation10 + $0xa8] ss:$16 sps:$4 sm:$0xff]   ;;  %2693 = vmatpush1.bf16.msra.mxu1 %v4000_v50 }
 0xa0b   : > { %v3656_v53 = vpop.f32.mrb[47].mxu1  ;;  %v4008_v52 = vld [vmem:[#allocation10 + $0xc4] ss:$16 sps:$4 sm:$0xff]  }
 0xa0c   : > { %v2276_v54 = vpop.f32.mrb[36].mxu0  ;;  %v4011_v53 = vld [vmem:[#allocation10 + $0xcc] ss:$16 sps:$4 sm:$0xff]   ;;  %2694 = vmatprep.subr.bf16.mxu1 %v4008_v52 }
 0xa0d   : > { %2330 = vrot.lane.b32.xlu0 %v2276_v54, %s4383_s8  ;;  %v3661_v55 = vpop.f32.mrb[37].mxu0  ;;  %v4386_v54 = vmov 0   ;;  %s509_s8 = sand.u32 1, %s5189_s28   ;;  %s4387_s28 = smov [#allocation13]  }
 0xa0e   : > { %v2279_v56 = vpop.f32.mrb[38].mxu0  ;;  %2714 = vmatprep.mubr.bf16.mxu1 %v4386_v54  ;;  %v4006_v55 = vld [vmem:[#allocation10 + $0xc0] ss:$16 sps:$4 sm:$0xff]  }
 0xa0f   : > { %v3662_v57 = vpop.f32.mrb[39].mxu0  ;;  %s520_s13 = scalar_lea.vmem %s5187_s22, %s3152_s24  ;;  %v4009_v56 = vld [vmem:[#allocation10 + $0xc8] ss:$16 sps:$4 sm:$0xff]   ;;  %2695 = vmatpush1.bf16.msra.mxu1 %v4006_v55  ;;  %s5190_s24 = sld [smem:[#allocation30_spill]] }
 0xa10   : > { %v2319_v58 = vpop.f32.mrb[48].mxu1  ;;  %v5020_v28 = vld [vmem:[%s520_s13] sm:$0x7]  ;;  %v4014_v57 = vld [vmem:[#allocation10 + $0xe4] ss:$16 sps:$4 sm:$0xff]   ;;  %s5191_s22 = sld [smem:[#allocation23_spill]] }
 0xa11   : > { %2334 = vrot.lane.b32.xlu1 %v2319_v58, %s4384_s23  ;;  %v3667_v59 = vpop.f32.mrb[49].mxu1  ;;  %v1502_v30 = vrot.slane %v5020_v28, %v1501_v26  ;;  %v4017_v58 = vld [vmem:[#allocation10 + $0xec] ss:$16 sps:$4 sm:$0xff]   ;;  %2696 = vmatprep.subr.bf16.mxu1 %v4014_v57  ;;  %s3149_s23 = sshll.u32 %s509_s8, 3  ;;  %s3301_s13 = sshll.u32 %s5181_s26, 1 }
 0xa12   : > { %v2322_v0 = vpop.f32.mrb[50].mxu1  ;;  %v4012_v59 = vld [vmem:[#allocation10 + $0xe0] ss:$16 sps:$4 sm:$0xff]   ;;  %s2981_s6 = sadd.s32 %s5179_s20, %s3301_s13  ;;  %s511_s10 = scalar_lea.vmem [#allocation13], %s3149_s23 }
 0xa13   : > { %v3668_v60 = vpop.f32.mrb[51].mxu1  ;;  %v4015_v0 = vld [vmem:[#allocation10 + $0xe8] ss:$16 sps:$4 sm:$0xff]   ;;  %2697 = vmatpush1.bf16.msra.mxu1 %v4012_v59  ;;  %s3302_s2 = sshll.u32 %s2981_s6, 7  ;;  %s2985_s21 = sshll.u32 %s511_s10, 4  ;;  %s5058_s21 = int_to_ptr.vmem [resolvable:$true] %s2985_s21 }
 0xa14   : > { %s2970_s20 = scalar_lea.sflag [#allocation6], %s509_s8  ;;  %s4235_s26 = scalar_lea.vmem %s5058_s21, 128 }
 0xa15   : > { %p4236_p9 = scmp.ne.s32.totalorder %s5058_s21, %s4235_s26  ;;  %s4239_s23 = sshll.u32 %s4387_s28, 4  ;;  %s4240_s23 = int_to_ptr.vmem [resolvable:$false] %s4239_s23 }
 0xa16   : > { %p5193_p11 = scmp.ne.s32.totalorder %s5191_s22, 0  ;;  %s4241_s13 = scalar_lea.vmem %s4240_s23, 256 }
 0xa17   : > { %p4242_p2 = scmp.lt.s32.totalorder %s5058_s21, %s4240_s23  ;;  %p4243_p5 = scmp.lt.s32.totalorder %s4241_s13, %s4235_s26 }
 0xa18   : > { %p4237_p1 = pnand %p4236_p9, %p5193_p11 }
 0xa19   : > { %p4244_p10 = por %p4243_p5, %p4242_p2 }
 0xa1a   : > { %p4238_p4 = pneg %p4237_p1 }
 0xa1c   : > { %p4245_p13 = pnand %p4244_p10, %p4238_p4 }
 0xa2c   : > { %1492 = vadd.xlane.f32.xlu0 %v1491_v2 }
 0xa7b   : > { %v2327_v3 = vpop.permute.xlu1 %2326 }
 0xa7c   : > { %v2337_v5 = vsel %vm943_vm1, %v2190_v38, %v2327_v3 }
 0xa7f   : > { %v2331_v4 = vpop.permute.xlu0 %2330 }
 0xa80   : > { %v2338_v7 = vsel %vm1372_vm4, %v2337_v5, %v2331_v4 }
 0xa83   : > { %v2335_v8 = vpop.permute.xlu1 %2334 }
 0xa84   : > { %v2339_v10 = vsel %vm1374_vm5, %v2338_v7, %v2335_v8  ;;  %v4018_v7 = vld [vmem:[#allocation12 + $0x40] sm:$0xff]  }
 0xa85   : > { %v2340_v11 = vpack.c.bf16 %v2339_v10, %v2339_v10  ;;  %v4019_v8 = vld [vmem:[#allocation12] sm:$0xff]   ;;  %3411 = vmatprep.subr.bf16.mxu1 %v4018_v7  ;;  %v4020_v10 = vld [vmem:[#allocation12 + $0x48] sm:$0xff]  }
 0xa87   : > { %3686 = vmatmul.mubr.bf16.vlgmr.msra.gmra.mrb[40].mxu0 %v2340_v11  ;;  %v4021_v11 = vld [vmem:[#allocation12 + $0x8] sm:$0xff]  }
 0xa88   : > { %2724 = vmatpush1.bf16.msra.mxu0 %v3973_v14  ;;  %2755 = vmatprep.mubr.bf16.mxu0 %v4386_v54  ;;  %v4024_v14 = vld [vmem:[#allocation12 + $0x58] sm:$0xff]  }
 0xa89   : > { %2725 = vmatprep.subr.bf16.mxu0 %v3981_v15  ;;  %v4027_v15 = vld [vmem:[#allocation12 + $0x20] sm:$0xff]  }
 0xa8c   : > { %2726 = vmatpush1.bf16.msra.mxu0 %v3979_v17  ;;  %v4029_v17 = vld [vmem:[#allocation12 + $0x28] sm:$0xff]  }
 0xa8d   : > { %2727 = vmatprep.subr.bf16.mxu0 %v3987_v19  ;;  %v4031_v19 = vld [vmem:[#allocation12 + $0x30] sm:$0xff]  }
 0xa90   : > { %2728 = vmatpush1.bf16.msra.mxu0 %v3985_v22  ;;  %v4033_v22 = vld [vmem:[#allocation12 + $0x38] sm:$0xff]  }
 0xa91   : > { %2729 = vmatprep.subr.bf16.mxu0 %v3993_v41 }
 0xa94   : > { %2730 = vmatpush1.bf16.msra.mxu0 %v3991_v43 }
 0xa95   : > { %2731 = vmatprep.subr.bf16.mxu0 %v3999_v47 }
 0xa98   : > { %2732 = vmatpush1.bf16.msra.mxu0 %v3997_v46 }
 0xa99   : > { %2733 = vmatprep.subr.bf16.mxu0 %v4005_v49 }
 0xa9c   : > { %2734 = vmatpush1.bf16.msra.mxu0 %v4003_v51 }
 0xa9d   : > { %2735 = vmatprep.subr.bf16.mxu0 %v4011_v53 }
 0xaa0   : > { %2736 = vmatpush1.bf16.msra.mxu0 %v4009_v56 }
 0xaa1   : > { %2737 = vmatprep.subr.bf16.mxu0 %v4017_v58 }
 0xaa4   : > { %2738 = vmatpush1.bf16.msra.mxu0 %v4015_v0 }
 0xab9   : > { %v1493_v23 = vpop.xlane.xlu0 %1492 }
 0xaba   : > { %v1495_v24 = vmul.f32 0.0078125, %v1493_v23  ;;  %v2512_v23 = vsub.s32 2, %v4815_v6 }
 0xabc   : > { %v1496_v25 = vadd.f32 1e-06, %v1495_v24  ;;  %v2500_v24 = vld [vmem:[%s5188_s12] sm:$0xf] }
 0xabd   : > { %v2505_v46 = vrot.slane %v2500_v24, %v1501_v26  ;;  %v2509_v47 = vrot.slane %v2500_v24, %v2464_v63  ;;  %v3283_v26 = vld [vmem:[%s5190_s24] ss:$0 sm:$0xff]  ;;  %s5056_s24 = scalar_lea.hbm %s5192_s3, %s3302_s2 }
 0xabe   : > { %4066 = vrsqrt.f32 %v1496_v25  ;;  %v2516_v25 = vsub.s32 3, %v4815_v6 }
 0xac8   : > { %v4067_v27 = vpop.eup %4066 }
 0xac9   : > { %v1498_v29 = vmul.f32 %v4067_v27, %v1490_v1  ;;  %v2465_v1 = vrot.slane %v5020_v28, %v2464_v63  ;;  %v2513_v27 = vrot.slane %v2500_v24, %v2512_v23 }
 0xacb   : > { %v1503_v33 = vmul.f32 %v1502_v30, %v1498_v29  ;;  %v2517_v29 = vrot.slane %v2500_v24, %v2516_v25 }
 0xb5a   : > { %v2448_v32 = vpop.f32.mrb[40].mxu0 }
 0xb5b   : > { %v2449_v34 = vadd.f32 %v3240_v31, %v2448_v32  ;;  %v3687_v9 = vpop.f32.mrb[41].mxu0 }
 0xb5c   : > { %v2451_v36 = vpop.f32.mrb[42].mxu0 }
 0xb5d   : > { %v2454_v37 = vadd.f32 %v2449_v34, %v1503_v33  ;;  %v3688_v38 = vpop.f32.mrb[43].mxu0 }
 0xb5f   : > { %v2455_v39 = vmul.f32 %v2454_v37, %v2454_v37 }
 0xb61   : > { %2456 = vadd.xlane.f32.xlu1 %v2455_v39 }
 0xbee   : > { %v2457_v60 = vpop.xlane.xlu1 %2456 }
 0xbef   : > { %v2458_v61 = vmul.f32 0.0078125, %v2457_v60 }
 0xbf1   : > { %v2459_v62 = vadd.f32 1e-06, %v2458_v61 }
 0xbf3   : > { %4068 = vrsqrt.f32 %v2459_v62 }
 0xbfd   : > { %v4069_v2 = vpop.eup %4068 }
 0xbfe   : > { %v2461_v3 = vmul.f32 %v4069_v2, %v2454_v37  ;;  %v2966_v2 = vrot.slane %v5020_v28, %v2512_v23 }
 0xc00   : > { %v5032_v4 = vmul.f32 %v2465_v1, %v2461_v3 }
 0xc02   : > { %v2467_v5 = vpack.c.bf16 %v5032_v4, %v5032_v4 }
 0xc04   : > { %2715 = vmatmul.mubr.bf16.vlgmr.msra.gmra.mrb[52].mxu1 %v2467_v5  ;;  %2756 = vmatmul.mubr.bf16.vlgmr.msra.gmra.mrb[44].mxu0 %v2467_v5 }
 0xc05   : > { %3412 = vmatpush3.bf16.msra.mxu1 %v4019_v8 }
 0xc06   : > { %3413 = vmatprep.subr.bf16.mxu1 %v4020_v10 }
 0xc09   : > { %3414 = vmatpush3.bf16.msra.mxu1 %v4021_v11 }
 0xc0a   : > { %3415 = vmatprep.subr.bf16.mxu1 %v4022_v12 }
 0xc0d   : > { %3416 = vmatpush3.bf16.msra.mxu1 %v4023_v13 }
 0xc0e   : > { %3417 = vmatprep.subr.bf16.mxu1 %v4024_v14 }
 0xc11   : > { %3418 = vmatpush3.bf16.msra.mxu1 %v4025_v21 }
 0xc12   : > { %3419 = vmatprep.subr.bf16.mxu1 %v4026_v35 }
 0xc15   : > { %3420 = vmatpush3.bf16.msra.mxu1 %v4027_v15 }
 0xc16   : > { %3421 = vmatprep.subr.bf16.mxu1 %v4028_v16 }
 0xc19   : > { %3422 = vmatpush3.bf16.msra.mxu1 %v4029_v17 }
 0xc1a   : > { %3423 = vmatprep.subr.bf16.mxu1 %v4030_v18 }
 0xc1d   : > { %3424 = vmatpush3.bf16.msra.mxu1 %v4031_v19 }
 0xc1e   : > { %3425 = vmatprep.subr.bf16.mxu1 %v4032_v20 }
 0xc21   : > { %3426 = vmatpush3.bf16.msra.mxu1 %v4033_v22 }
 0xcd7   : > { %v2716_v30 = vpop.f32.mrb[52].mxu1  ;;  %v2757_v31 = vpop.f32.mrb[44].mxu0 }
 0xcd8   : > { %v2758_v32 = vadd.f32 %v2757_v31, %v2513_v27  ;;  %v2718_v33 = vpop.f32.mrb[53].mxu1  ;;  %v2759_v34 = vpop.f32.mrb[45].mxu0  ;;  %v2717_v48 = vadd.f32 %v2716_v30, %v2505_v46 }
 0xcd9   : > { %v2760_v9 = vadd.f32 %v2759_v34, %v2517_v29  ;;  %v2720_v36 = vpop.f32.mrb[54].mxu1  ;;  %v2761_v37 = vpop.f32.mrb[46].mxu0  ;;  %v2719_v50 = vadd.f32 %v2718_v33, %v2509_v47 }
 0xcda   : > { %v3281_v38 = vmul.f32 -1.442695, %v2758_v32  ;;  %v2721_v39 = vpop.f32.mrb[55].mxu1  ;;  %v2762_v40 = vpop.f32.mrb[47].mxu0 }
 0xcdb   : > { %v3282_v41 = vmul.f32 -1.442695, %v2760_v9 }
 0xcdc   : > { %4070 = vpow2.f32 %v3281_v38 }
 0xcdd   : > { %4072 = vpow2.f32 %v3282_v41 }
 0xce6   : > { %v4071_v42 = vpop.eup %4070 }
 0xce7   : > { %v4073_v43 = vpop.eup %4072  ;;  %v2770_v44 = vadd.f32 1.0, %v4071_v42 }
 0xce8   : > { %v2771_v45 = vadd.f32 1.0, %v4073_v43 }
 0xce9   : > { %4074 = vrcp.f32 %v2770_v44 }
 0xcea   : > { %4076 = vrcp.f32 %v2771_v45 }
 0xcf3   : > { %v4075_v49 = vpop.eup %4074 }
 0xcf4   : > { %v4077_v51 = vpop.eup %4076  ;;  %v2776_v52 = vmul.f32 %v4075_v49, %v2717_v48 }
 0xcf5   : > { %v2777_v53 = vmul.f32 %v4077_v51, %v2719_v50 }
 0xcf6   : > { %v2778_v55 = vpack.c.bf16 %v2776_v52, %v2776_v52 }
 0xcf7   : > { %v2779_v54 = vpack.c.bf16 %v2777_v53, %v2777_v53 }
 0xcf9   : > { %2947 = vmatprep.mubr.bf16.mxu1 %v2779_v54 }
 0xcfa   : > { %2948 = vmatmul.mubr.bf16.vlgmr.msra.gmra.mrb[56].mxu1 %v2778_v55 }
 0xdcd   : > { %v3427_v56 = vpop.f32.mrb[56].mxu1 }
 0xdce   : > { %v3428_v6 = vpop.f32.mrb[57].mxu1 }
 0xdcf   : > { %v3429_v57 = vadd.f32 %v3428_v6, %v3427_v56  ;;  %v3430_v58 = vpop.f32.mrb[58].mxu1 }
 0xdd0   : > { %v3431_v59 = vpop.f32.mrb[59].mxu1 }
 0xdd1   : > { %v2950_v0 = vadd.f32 %v3429_v57, %v3283_v26 }
 0xdd3   : > { %v2955_v60 = vadd.f32 %v2950_v0, %v5032_v4 }
 0xdd5   : > { %v2956_v61 = vmul.f32 %v2955_v60, %v2955_v60 }
 0xdd7   : > { %2957 = vadd.xlane.f32.xlu0 %v2956_v61 }
 0xe64   : > { %v2958_v62 = vpop.xlane.xlu0 %2957 }
 0xe65   : > { %v2959_v63 = vmul.f32 0.0078125, %v2958_v62 }
 0xe67   : > { %v2960_v1 = vadd.f32 1e-06, %v2959_v63 }
 0xe69   : > { %4078 = vrsqrt.f32 %v2960_v1 }
 0xe73   : > { %v4079_v3 = vpop.eup %4078 }
 0xe74   : > { %v2962_v5 = vmul.f32 %v4079_v3, %v2955_v60 }
 0xe76   : > { %v2967_v7 = vmul.f32 %v2966_v2, %v2962_v5 }
 0xe78   : > { %2968 = vst [vmem:[%s511_s10] sm:$0xff] %v2967_v7 }
 0xe79   : > { %4248 = shalt.err (!%p4245_p13)
}
 0xe7a   : > { %s4249_s8 = scalar_lea.hbm %s5056_s24, 128  ;;  %s4253_s10 = scalar_lea.hbm %s5192_s3, 512 }
 0xe7b   : > { %p4250_p3 = scmp.ne.s32.totalorder %s5056_s24, %s4249_s8  ;;  %p4254_p0 = scmp.lt.u32.totalorder %s5056_s24, %s5192_s3 }
 0xe7c   : > { %p4255_p6 = scmp.lt.u32.totalorder %s4253_s10, %s4249_s8  ;;  %p4257_p9 = scmp.lt.u32.totalorder %s4249_s8, %s5056_s24 }
 0xe7d   : > { %p4251_p7 = pnand %p4250_p3, %p5193_p11 }
 0xe7e   : > { %p4256_p8 = por %p4255_p6, %p4254_p0 }
 0xe7f   : > { %p4252_p12 = pneg %p4251_p7 }
 0xe80   : > { %p4258_p1 = por %p4257_p9, %p4256_p8 }
 0xe82   : > { %p4259_p4 = pnand %p4258_p1, %p4252_p12 }
 0xe84   : > { %4262 = shalt.err (!%p4259_p4)
}
 0xe85   : > { %3707 = dma.vmem_to_hbm [thread:$0]  (%p5193_p11), %s5058_s21, 128, %s5056_s24, %s2970_s20  }
 0xe86 PF: > { %s5194_s26 = sld [smem:[#allocation19_spill]]  ;;  %s5195_s28 = sld [smem:[#allocation24_spill]] }
 0xe87   : > { %p3739_p2 = scmp.ge.s32.totalorder %s4367_s17, 2 }
 0xe8c   : > { %s2997_s23 = sand.u32 1, %s5194_s26   ;;  %p5196_p5 = scmp.ne.s32.totalorder %s5195_s28, 0 }
 0xe8d   : > { %s2998_s13 = scalar_lea.sflag [#allocation6], %s2997_s23 }
 0xe8e   : > { %p3727_p10 = pnand %p3739_p2, %p5196_p5 }
 0xe90   : > { %4322 = dma.done.wait (!%p3727_p10), %s2998_s13, 128  }
 0xe91   : > { %4324 = vsyncadd (!%p3727_p10), %s2998_s13, 4294967168  ;;  %s36_s17 = sadd.s32 1, %s4367_s17   ;;  %s5197_s0 = sld [smem:[#allocation20_spill]] }
 0xe92   : > { %p33_p13 = scmp.ge.s32.totalorder %s36_s17, 6   ;;  %s5198_s26 = smov %s4335_s27 }
 0xe93   : > { %s5199_s27 = smov %s4669_s14  ;;  %s5200_s28 = smov %s4343_s29 }
 0xe94   : > { %s5201_s29 = smov %s4347_s30  ;;  %s5202_s30 = smov %s4666_s11 }
 0xe95   : > { %s5203_s13 = smov %s4359_s15  ;;  %s5204_s14 = smov %s4363_s16 }
 0xe96   : > { %s5205_s15 = smov %s5208_s18  ;;  %s5206_s16 = smov %s5212_s25 }
 0xe97   :  { %35 = sbr.rel (!%p33_p13) target bundleno = 28 (0x1c), region = 144 }
 0xe9e   :  { %3003 = vsyncpa [#allocation5], 1 }
 0xe9f   :  { %3005 = vsyncpa [#allocation5 + $0x1], 1 }
 0xea0   :  { %3006 = vsyncpa [#allocation8], 1 }
 0xea1   :  { %3007 = vsyncpa [#allocation11], 1 }
 0xea2   :  { %3008 = vsyncpa [#allocation6], 1 }
 0xea3   :  { %3010 = vsyncpa [#allocation6 + $0x1], 1 }

</bundles_post_ra>
